<compile_context>
chip_gen: v7x
topology: tpu7x:2x2x1
jax: 0.10.0
libtpu: 0.0.40
codegen_flags: <defaults>
</compile_context>

<pallas_src>
import functools

import jax
import jax.numpy as jnp
from jax import lax
from jax.experimental import pallas as pl
from jax.experimental.pallas import tpu as pltpu


# ------------------------- fused gate + expert kernel -------------------------

def _moe_kernel(x_ref, wa_ref, wb_ref, proto_ref, gate_ref, out_ref, *,
                apply_relu, num_experts, mid_dim, out_dim):
    # x_ref: (B, D)   wa_ref: (D, P*M)   wb_ref: (P, M, O)   proto_ref: (T, D)
    # gate_ref: (B, T)   out_ref: (B, P*O)
    x = x_ref[...]

    # ---- gate: cosine similarity (F.normalize semantics, eps = 1e-12 on the norm) ----
    # rsqrt goes to the EUP slot (cheaper than sqrt + divide on the VALU, esp. on v5e).
    xn = x * lax.rsqrt(jnp.maximum(jnp.sum(x * x, axis=-1, keepdims=True), 1e-24))
    proto = proto_ref[...]
    pn = proto * lax.rsqrt(
        jnp.maximum(jnp.sum(proto * proto, axis=-1, keepdims=True), 1e-24))
    if proto_ref.shape[0] == 1:
        # T == 1: VPU multiply-reduce; an MXU call for a 1-column result is pure overhead.
        gate = jnp.sum(xn * pn, axis=-1, keepdims=True)
    else:
        gate = jnp.dot(xn, pn.T, preferred_element_type=jnp.float32)
    gate_ref[...] = gate.astype(gate_ref.dtype)

    # ---- experts: one big lane-dense matmul, then unrolled per-expert contraction ----
    mid = jnp.dot(x, wa_ref[...], preferred_element_type=jnp.float32)     # (B, P*M)
    if apply_relu:                                                        # 'MLP_expert' in mode
        mid = jnp.maximum(mid, 0.0)
    # TODO(synk): for production-size D/P/M/O, cast activations/weights to bf16 (keep f32
    # accumulation) and re-derive block sizes against the v7x 64 MiB VMEM budget.
    for p in range(num_experts):                                          # static, fully unrolled
        mid_p = mid[:, p * mid_dim:(p + 1) * mid_dim]                     # (B, M)
        out_p = jnp.dot(mid_p, wb_ref[p], preferred_element_type=jnp.float32)  # (B, O)
        out_ref[:, p * out_dim:(p + 1) * out_dim] = out_p.astype(out_ref.dtype)


def _moe_forward(x, wa_flat, w_b, prototype, *, apply_relu, topk):
    """x: (B, D); wa_flat: (D, P*M); w_b: (P, M, O); prototype: (T, D)."""
    B, D = x.shape
    P, M, O = w_b.shape
    T = prototype.shape[0]

    x = lax.stop_gradient(x)                                              # .detach()

    flops = 2 * B * D * P * M + 2 * B * P * M * O + 2 * B * T * D + 4 * (B * D + T * D)
    bytes_accessed = 4 * (B * D + D * P * M + P * M * O + T * D + B * T + B * P * O)

    gate_out, expert_flat = pl.pallas_call(
        functools.partial(_moe_kernel, apply_relu=apply_relu,
                          num_experts=P, mid_dim=M, out_dim=O),
        out_shape=(jax.ShapeDtypeStruct((B, T), x.dtype),
                   jax.ShapeDtypeStruct((B, P * O), x.dtype)),
        grid_spec=pltpu.PrefetchScalarGridSpec(
            num_scalar_prefetch=0,
            grid=(1,),                                                    # single grid point
            in_specs=[
                pl.BlockSpec((B, D), lambda i: (0, 0)),
                pl.BlockSpec((D, P * M), lambda i: (0, 0)),
                pl.BlockSpec((P, M, O), lambda i: (0, 0, 0)),
                pl.BlockSpec((T, D), lambda i: (0, 0)),
            ],
            out_specs=[
                pl.BlockSpec((B, T), lambda i: (0, 0)),
                pl.BlockSpec((B, P * O), lambda i: (0, 0)),               # lane-dense output
            ],
        ),
        compiler_params=pltpu.CompilerParams(dimension_semantics=("arbitrary",)),
        cost_estimate=pl.CostEstimate(flops=flops, transcendentals=B + T,
                                      bytes_accessed=bytes_accessed),
    )(x, wa_flat, w_b, prototype)

    # Mirrors the reference's torch.topk(gate_out, topk): result is unused, so XLA DCE
    # removes it under jit.
    _gate_topk = lax.top_k(gate_out, topk)

    return expert_flat.reshape(B, P, O), gate_out


# --------------------------------- MoEPrompt ----------------------------------

class MoEPromptPallas:
    def __init__(self, mode, input_dim, prompt_dim, prompt_length,
                 prompt_pool_size, topk=None, expert_mid=None, *, key):
        del prompt_pool_size  # TODO(synk): reference passes this to ExpertNet with mismatched arity
        self.mode = mode
        self.topk = topk
        self.apply_relu = 'MLP_expert' in mode
        k1, k2, k3 = jax.random.split(key, 3)
        # single-task parameter lists (task_count == 0), deterministic init
        self.w_a = 0.02 * jax.random.normal(
            k1, (input_dim, prompt_length, expert_mid), jnp.float32)      # (D, P, M)
        self.w_b = 0.02 * jax.random.normal(
            k2, (prompt_length, expert_mid, prompt_dim), jnp.float32)     # (P, M, O)
        self.prototype = jax.random.normal(
            k3, (1, prompt_length), jnp.float32)                          # stacked list -> (T, P)
        # Hoisted weight re-layout: static, done once (not per forward call).
        self.wa_flat = self.w_a.reshape(input_dim, prompt_length * expert_mid)  # (D, P*M)
        self._forward = jax.jit(functools.partial(
            _moe_forward, apply_relu=self.apply_relu, topk=self.topk))

    def __call__(self, img_feature, train=False, task_id=None):
        expert_out, _gate_out = self._forward(
            img_feature, self.wa_flat, self.w_b, self.prototype)
        return expert_out, 0, img_feature


# ------------------------------------ Main -------------------------------------

if __name__ == "__main__":
    B = 8               # batch
    input_dim = 32      # D  (must equal prompt_length for the gate matmul — reference quirk)
    prompt_length = 32  # P  (number of experts / prompt tokens)
    prompt_dim = 64     # O  (expert output dim)
    expert_mid = 16     # M
    topk = 1
    mode = "MLP_expert"

    key = jax.random.PRNGKey(0)
    k_param, k_x = jax.random.split(key)

    model = MoEPromptPallas(mode, input_dim, prompt_dim, prompt_length,
                            prompt_pool_size=1, topk=topk, expert_mid=expert_mid,
                            key=k_param)

    x = jax.random.normal(k_x, (B, input_dim), jnp.float32)

    expert_out, zero, passthrough = model(x)
    expert_out = jax.block_until_ready(expert_out)

    # pure-JAX reference of ExpertNet.forward
    x_mid = x @ model.w_a.reshape(input_dim, -1)
    if model.apply_relu:
        x_mid = jnp.maximum(x_mid, 0.0)
    x_mid = x_mid.reshape(B, prompt_length, expert_mid)
    ref = jnp.einsum('bpm,pmo->bpo', x_mid, model.w_b)

    # pure-JAX reference of GateNet_normal.forward (cosine similarity)
    xn = x / jnp.maximum(jnp.linalg.norm(x, axis=-1, keepdims=True), 1e-12)
    pn = model.prototype / jnp.maximum(
        jnp.linalg.norm(model.prototype, axis=-1, keepdims=True), 1e-12)
    gate_ref = xn @ pn.T
    gate_out = model._forward(x, model.wa_flat, model.w_b, model.prototype)[1]
    gate_out = jax.block_until_ready(gate_out)

    assert expert_out.shape == (B, prompt_length, prompt_dim)
    assert zero == 0
    assert passthrough.shape == x.shape
    assert jnp.allclose(expert_out, ref, atol=1e-4, rtol=1e-4)
    assert jnp.allclose(gate_out, gate_ref, atol=1e-4, rtol=1e-4)

    print("KERNEL_OK")
</pallas_src>

<mosaic_0001>
module attributes {stable_mosaic.version = 11 : i64} {
  func.func @_moe_kernel(%arg0: i32, %arg1: memref<8x32xf32, #tpu.memory_space<vmem>>, %arg2: memref<32x512xf32, #tpu.memory_space<vmem>>, %arg3: memref<32x16x64xf32, #tpu.memory_space<vmem>>, %arg4: memref<1x32xf32, #tpu.memory_space<vmem>>, %arg5: memref<8x1xf32, #tpu.memory_space<vmem>>, %arg6: memref<8x2048xf32, #tpu.memory_space<vmem>>) attributes {dimension_semantics = [#tpu.dimension_semantics<arbitrary>], iteration_bounds = array<i64: 1>, scalar_prefetch = 0 : i64, scratch_operands = 0 : i64, tpu.core_type = #tpu.core_type<tc>, window_params = [{pipeline_mode = #tpu.pipeline_mode<synchronous>, transform_indices = @transform_0, window_bounds = array<i64: 8, 32>}, {pipeline_mode = #tpu.pipeline_mode<synchronous>, transform_indices = @transform_1, window_bounds = array<i64: 32, 512>}, {pipeline_mode = #tpu.pipeline_mode<synchronous>, transform_indices = @transform_2, window_bounds = array<i64: 32, 16, 64>}, {pipeline_mode = #tpu.pipeline_mode<synchronous>, transform_indices = @transform_3, window_bounds = array<i64: 1, 32>}, {pipeline_mode = #tpu.pipeline_mode<synchronous>, transform_indices = @transform_4, window_bounds = array<i64: 8, 1>}, {pipeline_mode = #tpu.pipeline_mode<synchronous>, transform_indices = @transform_5, window_bounds = array<i64: 8, 2048>}]} {
    %c0 = arith.constant 0 : index
    %c0_0 = arith.constant 0 : index
    %0 = vector.load %arg1[%c0, %c0_0] : memref<8x32xf32, #tpu.memory_space<vmem>>, vector<8x32xf32>
    %1 = arith.mulf %0, %0 : vector<8x32xf32>
    %cst = arith.constant dense<0.000000e+00> : vector<8xf32>
    %2 = vector.multi_reduction <add>, %1, %cst [1] : vector<8x32xf32> to vector<8xf32>
    %3 = vector.shape_cast %2 : vector<8xf32> to vector<8x1xf32>
    %cst_1 = arith.constant 1.000000e-24 : f32
    %4 = vector.broadcast %cst_1 : f32 to vector<8x1xf32>
    %5 = arith.maximumf %3, %4 : vector<8x1xf32>
    %6 = math.rsqrt %5 : vector<8x1xf32>
    %7 = vector.broadcast %6 : vector<8x1xf32> to vector<8x32xf32>
    %8 = arith.mulf %0, %7 : vector<8x32xf32>
    %c0_2 = arith.constant 0 : index
    %c0_3 = arith.constant 0 : index
    %9 = vector.load %arg4[%c0_2, %c0_3] : memref<1x32xf32, #tpu.memory_space<vmem>>, vector<1x32xf32>
    %10 = arith.mulf %9, %9 : vector<1x32xf32>
    %cst_4 = arith.constant dense<0.000000e+00> : vector<1xf32>
    %11 = vector.multi_reduction <add>, %10, %cst_4 [1] : vector<1x32xf32> to vector<1xf32>
    %12 = vector.shape_cast %11 : vector<1xf32> to vector<1x1xf32>
    %cst_5 = arith.constant 1.000000e-24 : f32
    %13 = vector.broadcast %cst_5 : f32 to vector<1x1xf32>
    %14 = arith.maximumf %12, %13 : vector<1x1xf32>
    %15 = math.rsqrt %14 : vector<1x1xf32>
    %16 = vector.broadcast %15 : vector<1x1xf32> to vector<1x32xf32>
    %17 = arith.mulf %9, %16 : vector<1x32xf32>
    %18 = vector.broadcast %17 : vector<1x32xf32> to vector<8x32xf32>
    %19 = arith.mulf %8, %18 : vector<8x32xf32>
    %cst_6 = arith.constant dense<0.000000e+00> : vector<8xf32>
    %20 = vector.multi_reduction <add>, %19, %cst_6 [1] : vector<8x32xf32> to vector<8xf32>
    %21 = vector.shape_cast %20 : vector<8xf32> to vector<8x1xf32>
    %c0_7 = arith.constant 0 : index
    %c0_8 = arith.constant 0 : index
    %22 = vector.load %arg5[%c0_7, %c0_8] : memref<8x1xf32, #tpu.memory_space<vmem>>, vector<8x1xf32>
    tpu.vector_store %arg5[%c0_7, %c0_8], %21 {strides = array<i32>} : memref<8x1xf32, #tpu.memory_space<vmem>>, vector<8x1xf32>,
    %c0_9 = arith.constant 0 : index
    %c0_10 = arith.constant 0 : index
    %23 = vector.load %arg2[%c0_9, %c0_10] : memref<32x512xf32, #tpu.memory_space<vmem>>, vector<32x512xf32>
    %cst_11 = arith.constant dense<0.000000e+00> : vector<8x512xf32>
    %24 = tpu.matmul %0, %23, %cst_11 {dimension_numbers = #tpu.dot_dimension_numbers<[1], [0], [0], [1], [0, 0, 1, 1], [], []>} : vector<8x32xf32>, vector<32x512xf32>, vector<8x512xf32> -> vector<8x512xf32>
    %cst_12 = arith.constant 0.000000e+00 : f32
    %25 = vector.broadcast %cst_12 : f32 to vector<8x512xf32>
    %26 = arith.maximumf %24, %25 : vector<8x512xf32>
    %27 = vector.extract_strided_slice %26 {offsets = [0, 0], sizes = [8, 16], strides = [1, 1]} : vector<8x512xf32> to vector<8x16xf32>
    %c0_13 = arith.constant 0 : index
    %c0_14 = arith.constant 0 : index
    %c0_15 = arith.constant 0 : index
    %28 = vector.load %arg3[%c0_13, %c0_14, %c0_15] : memref<32x16x64xf32, #tpu.memory_space<vmem>>, vector<1x16x64xf32>
    %29 = vector.shape_cast %28 : vector<1x16x64xf32> to vector<16x64xf32>
    %cst_16 = arith.constant dense<0.000000e+00> : vector<8x64xf32>
    %30 = tpu.matmul %27, %29, %cst_16 {dimension_numbers = #tpu.dot_dimension_numbers<[1], [0], [0], [1], [0, 0, 1, 1], [], []>} : vector<8x16xf32>, vector<16x64xf32>, vector<8x64xf32> -> vector<8x64xf32>
    %c0_17 = arith.constant 0 : index
    %c0_18 = arith.constant 0 : index
    %31 = vector.load %arg6[%c0_17, %c0_18] : memref<8x2048xf32, #tpu.memory_space<vmem>>, vector<8x64xf32>
    tpu.vector_store %arg6[%c0_17, %c0_18], %30 {strides = array<i32>} : memref<8x2048xf32, #tpu.memory_space<vmem>>, vector<8x64xf32>,
    %32 = vector.extract_strided_slice %26 {offsets = [0, 16], sizes = [8, 16], strides = [1, 1]} : vector<8x512xf32> to vector<8x16xf32>
    %c1 = arith.constant 1 : index
    %c0_19 = arith.constant 0 : index
    %c0_20 = arith.constant 0 : index
    %33 = vector.load %arg3[%c1, %c0_19, %c0_20] : memref<32x16x64xf32, #tpu.memory_space<vmem>>, vector<1x16x64xf32>
    %34 = vector.shape_cast %33 : vector<1x16x64xf32> to vector<16x64xf32>
    %cst_21 = arith.constant dense<0.000000e+00> : vector<8x64xf32>
    %35 = tpu.matmul %32, %34, %cst_21 {dimension_numbers = #tpu.dot_dimension_numbers<[1], [0], [0], [1], [0, 0, 1, 1], [], []>} : vector<8x16xf32>, vector<16x64xf32>, vector<8x64xf32> -> vector<8x64xf32>
    %c0_22 = arith.constant 0 : index
    %c64 = arith.constant 64 : index
    %36 = vector.load %arg6[%c0_22, %c64] : memref<8x2048xf32, #tpu.memory_space<vmem>>, vector<8x64xf32>
    tpu.vector_store %arg6[%c0_22, %c64], %35 {strides = array<i32>} : memref<8x2048xf32, #tpu.memory_space<vmem>>, vector<8x64xf32>,
    %37 = vector.extract_strided_slice %26 {offsets = [0, 32], sizes = [8, 16], strides = [1, 1]} : vector<8x512xf32> to vector<8x16xf32>
    %c2 = arith.constant 2 : index
    %c0_23 = arith.constant 0 : index
    %c0_24 = arith.constant 0 : index
    %38 = vector.load %arg3[%c2, %c0_23, %c0_24] : memref<32x16x64xf32, #tpu.memory_space<vmem>>, vector<1x16x64xf32>
    %39 = vector.shape_cast %38 : vector<1x16x64xf32> to vector<16x64xf32>
    %cst_25 = arith.constant dense<0.000000e+00> : vector<8x64xf32>
    %40 = tpu.matmul %37, %39, %cst_25 {dimension_numbers = #tpu.dot_dimension_numbers<[1], [0], [0], [1], [0, 0, 1, 1], [], []>} : vector<8x16xf32>, vector<16x64xf32>, vector<8x64xf32> -> vector<8x64xf32>
    %c0_26 = arith.constant 0 : index
    %c128 = arith.constant 128 : index
    %41 = vector.load %arg6[%c0_26, %c128] : memref<8x2048xf32, #tpu.memory_space<vmem>>, vector<8x64xf32>
    tpu.vector_store %arg6[%c0_26, %c128], %40 {strides = array<i32>} : memref<8x2048xf32, #tpu.memory_space<vmem>>, vector<8x64xf32>,
    %42 = vector.extract_strided_slice %26 {offsets = [0, 48], sizes = [8, 16], strides = [1, 1]} : vector<8x512xf32> to vector<8x16xf32>
    %c3 = arith.constant 3 : index
    %c0_27 = arith.constant 0 : index
    %c0_28 = arith.constant 0 : index
    %43 = vector.load %arg3[%c3, %c0_27, %c0_28] : memref<32x16x64xf32, #tpu.memory_space<vmem>>, vector<1x16x64xf32>
    %44 = vector.shape_cast %43 : vector<1x16x64xf32> to vector<16x64xf32>
    %cst_29 = arith.constant dense<0.000000e+00> : vector<8x64xf32>
    %45 = tpu.matmul %42, %44, %cst_29 {dimension_numbers = #tpu.dot_dimension_numbers<[1], [0], [0], [1], [0, 0, 1, 1], [], []>} : vector<8x16xf32>, vector<16x64xf32>, vector<8x64xf32> -> vector<8x64xf32>
    %c0_30 = arith.constant 0 : index
    %c192 = arith.constant 192 : index
    %46 = vector.load %arg6[%c0_30, %c192] : memref<8x2048xf32, #tpu.memory_space<vmem>>, vector<8x64xf32>
    tpu.vector_store %arg6[%c0_30, %c192], %45 {strides = array<i32>} : memref<8x2048xf32, #tpu.memory_space<vmem>>, vector<8x64xf32>,
    %47 = vector.extract_strided_slice %26 {offsets = [0, 64], sizes = [8, 16], strides = [1, 1]} : vector<8x512xf32> to vector<8x16xf32>
    %c4 = arith.constant 4 : index
    %c0_31 = arith.constant 0 : index
    %c0_32 = arith.constant 0 : index
    %48 = vector.load %arg3[%c4, %c0_31, %c0_32] : memref<32x16x64xf32, #tpu.memory_space<vmem>>, vector<1x16x64xf32>
    %49 = vector.shape_cast %48 : vector<1x16x64xf32> to vector<16x64xf32>
    %cst_33 = arith.constant dense<0.000000e+00> : vector<8x64xf32>
    %50 = tpu.matmul %47, %49, %cst_33 {dimension_numbers = #tpu.dot_dimension_numbers<[1], [0], [0], [1], [0, 0, 1, 1], [], []>} : vector<8x16xf32>, vector<16x64xf32>, vector<8x64xf32> -> vector<8x64xf32>
    %c0_34 = arith.constant 0 : index
    %c256 = arith.constant 256 : index
    %51 = vector.load %arg6[%c0_34, %c256] : memref<8x2048xf32, #tpu.memory_space<vmem>>, vector<8x64xf32>
    tpu.vector_store %arg6[%c0_34, %c256], %50 {strides = array<i32>} : memref<8x2048xf32, #tpu.memory_space<vmem>>, vector<8x64xf32>,
    %52 = vector.extract_strided_slice %26 {offsets = [0, 80], sizes = [8, 16], strides = [1, 1]} : vector<8x512xf32> to vector<8x16xf32>
    %c5 = arith.constant 5 : index
    %c0_35 = arith.constant 0 : index
    %c0_36 = arith.constant 0 : index
    %53 = vector.load %arg3[%c5, %c0_35, %c0_36] : memref<32x16x64xf32, #tpu.memory_space<vmem>>, vector<1x16x64xf32>
    %54 = vector.shape_cast %53 : vector<1x16x64xf32> to vector<16x64xf32>
    %cst_37 = arith.constant dense<0.000000e+00> : vector<8x64xf32>
    %55 = tpu.matmul %52, %54, %cst_37 {dimension_numbers = #tpu.dot_dimension_numbers<[1], [0], [0], [1], [0, 0, 1, 1], [], []>} : vector<8x16xf32>, vector<16x64xf32>, vector<8x64xf32> -> vector<8x64xf32>
    %c0_38 = arith.constant 0 : index
    %c320 = arith.constant 320 : index
    %56 = vector.load %arg6[%c0_38, %c320] : memref<8x2048xf32, #tpu.memory_space<vmem>>, vector<8x64xf32>
    tpu.vector_store %arg6[%c0_38, %c320], %55 {strides = array<i32>} : memref<8x2048xf32, #tpu.memory_space<vmem>>, vector<8x64xf32>,
    %57 = vector.extract_strided_slice %26 {offsets = [0, 96], sizes = [8, 16], strides = [1, 1]} : vector<8x512xf32> to vector<8x16xf32>
    %c6 = arith.constant 6 : index
    %c0_39 = arith.constant 0 : index
    %c0_40 = arith.constant 0 : index
    %58 = vector.load %arg3[%c6, %c0_39, %c0_40] : memref<32x16x64xf32, #tpu.memory_space<vmem>>, vector<1x16x64xf32>
    %59 = vector.shape_cast %58 : vector<1x16x64xf32> to vector<16x64xf32>
    %cst_41 = arith.constant dense<0.000000e+00> : vector<8x64xf32>
    %60 = tpu.matmul %57, %59, %cst_41 {dimension_numbers = #tpu.dot_dimension_numbers<[1], [0], [0], [1], [0, 0, 1, 1], [], []>} : vector<8x16xf32>, vector<16x64xf32>, vector<8x64xf32> -> vector<8x64xf32>
    %c0_42 = arith.constant 0 : index
    %c384 = arith.constant 384 : index
    %61 = vector.load %arg6[%c0_42, %c384] : memref<8x2048xf32, #tpu.memory_space<vmem>>, vector<8x64xf32>
    tpu.vector_store %arg6[%c0_42, %c384], %60 {strides = array<i32>} : memref<8x2048xf32, #tpu.memory_space<vmem>>, vector<8x64xf32>,
    %62 = vector.extract_strided_slice %26 {offsets = [0, 112], sizes = [8, 16], strides = [1, 1]} : vector<8x512xf32> to vector<8x16xf32>
    %c7 = arith.constant 7 : index
    %c0_43 = arith.constant 0 : index
    %c0_44 = arith.constant 0 : index
    %63 = vector.load %arg3[%c7, %c0_43, %c0_44] : memref<32x16x64xf32, #tpu.memory_space<vmem>>, vector<1x16x64xf32>
    %64 = vector.shape_cast %63 : vector<1x16x64xf32> to vector<16x64xf32>
    %cst_45 = arith.constant dense<0.000000e+00> : vector<8x64xf32>
    %65 = tpu.matmul %62, %64, %cst_45 {dimension_numbers = #tpu.dot_dimension_numbers<[1], [0], [0], [1], [0, 0, 1, 1], [], []>} : vector<8x16xf32>, vector<16x64xf32>, vector<8x64xf32> -> vector<8x64xf32>
    %c0_46 = arith.constant 0 : index
    %c448 = arith.constant 448 : index
    %66 = vector.load %arg6[%c0_46, %c448] : memref<8x2048xf32, #tpu.memory_space<vmem>>, vector<8x64xf32>
    tpu.vector_store %arg6[%c0_46, %c448], %65 {strides = array<i32>} : memref<8x2048xf32, #tpu.memory_space<vmem>>, vector<8x64xf32>,
    %67 = vector.extract_strided_slice %26 {offsets = [0, 128], sizes = [8, 16], strides = [1, 1]} : vector<8x512xf32> to vector<8x16xf32>
    %c8 = arith.constant 8 : index
    %c0_47 = arith.constant 0 : index
    %c0_48 = arith.constant 0 : index
    %68 = vector.load %arg3[%c8, %c0_47, %c0_48] : memref<32x16x64xf32, #tpu.memory_space<vmem>>, vector<1x16x64xf32>
    %69 = vector.shape_cast %68 : vector<1x16x64xf32> to vector<16x64xf32>
    %cst_49 = arith.constant dense<0.000000e+00> : vector<8x64xf32>
    %70 = tpu.matmul %67, %69, %cst_49 {dimension_numbers = #tpu.dot_dimension_numbers<[1], [0], [0], [1], [0, 0, 1, 1], [], []>} : vector<8x16xf32>, vector<16x64xf32>, vector<8x64xf32> -> vector<8x64xf32>
    %c0_50 = arith.constant 0 : index
    %c512 = arith.constant 512 : index
    %71 = vector.load %arg6[%c0_50, %c512] : memref<8x2048xf32, #tpu.memory_space<vmem>>, vector<8x64xf32>
    tpu.vector_store %arg6[%c0_50, %c512], %70 {strides = array<i32>} : memref<8x2048xf32, #tpu.memory_space<vmem>>, vector<8x64xf32>,
    %72 = vector.extract_strided_slice %26 {offsets = [0, 144], sizes = [8, 16], strides = [1, 1]} : vector<8x512xf32> to vector<8x16xf32>
    %c9 = arith.constant 9 : index
    %c0_51 = arith.constant 0 : index
    %c0_52 = arith.constant 0 : index
    %73 = vector.load %arg3[%c9, %c0_51, %c0_52] : memref<32x16x64xf32, #tpu.memory_space<vmem>>, vector<1x16x64xf32>
    %74 = vector.shape_cast %73 : vector<1x16x64xf32> to vector<16x64xf32>
    %cst_53 = arith.constant dense<0.000000e+00> : vector<8x64xf32>
    %75 = tpu.matmul %72, %74, %cst_53 {dimension_numbers = #tpu.dot_dimension_numbers<[1], [0], [0], [1], [0, 0, 1, 1], [], []>} : vector<8x16xf32>, vector<16x64xf32>, vector<8x64xf32> -> vector<8x64xf32>
    %c0_54 = arith.constant 0 : index
    %c576 = arith.constant 576 : index
    %76 = vector.load %arg6[%c0_54, %c576] : memref<8x2048xf32, #tpu.memory_space<vmem>>, vector<8x64xf32>
    tpu.vector_store %arg6[%c0_54, %c576], %75 {strides = array<i32>} : memref<8x2048xf32, #tpu.memory_space<vmem>>, vector<8x64xf32>,
    %77 = vector.extract_strided_slice %26 {offsets = [0, 160], sizes = [8, 16], strides = [1, 1]} : vector<8x512xf32> to vector<8x16xf32>
    %c10 = arith.constant 10 : index
    %c0_55 = arith.constant 0 : index
    %c0_56 = arith.constant 0 : index
    %78 = vector.load %arg3[%c10, %c0_55, %c0_56] : memref<32x16x64xf32, #tpu.memory_space<vmem>>, vector<1x16x64xf32>
    %79 = vector.shape_cast %78 : vector<1x16x64xf32> to vector<16x64xf32>
    %cst_57 = arith.constant dense<0.000000e+00> : vector<8x64xf32>
    %80 = tpu.matmul %77, %79, %cst_57 {dimension_numbers = #tpu.dot_dimension_numbers<[1], [0], [0], [1], [0, 0, 1, 1], [], []>} : vector<8x16xf32>, vector<16x64xf32>, vector<8x64xf32> -> vector<8x64xf32>
    %c0_58 = arith.constant 0 : index
    %c640 = arith.constant 640 : index
    %81 = vector.load %arg6[%c0_58, %c640] : memref<8x2048xf32, #tpu.memory_space<vmem>>, vector<8x64xf32>
    tpu.vector_store %arg6[%c0_58, %c640], %80 {strides = array<i32>} : memref<8x2048xf32, #tpu.memory_space<vmem>>, vector<8x64xf32>,
    %82 = vector.extract_strided_slice %26 {offsets = [0, 176], sizes = [8, 16], strides = [1, 1]} : vector<8x512xf32> to vector<8x16xf32>
    %c11 = arith.constant 11 : index
    %c0_59 = arith.constant 0 : index
    %c0_60 = arith.constant 0 : index
    %83 = vector.load %arg3[%c11, %c0_59, %c0_60] : memref<32x16x64xf32, #tpu.memory_space<vmem>>, vector<1x16x64xf32>
    %84 = vector.shape_cast %83 : vector<1x16x64xf32> to vector<16x64xf32>
    %cst_61 = arith.constant dense<0.000000e+00> : vector<8x64xf32>
    %85 = tpu.matmul %82, %84, %cst_61 {dimension_numbers = #tpu.dot_dimension_numbers<[1], [0], [0], [1], [0, 0, 1, 1], [], []>} : vector<8x16xf32>, vector<16x64xf32>, vector<8x64xf32> -> vector<8x64xf32>
    %c0_62 = arith.constant 0 : index
    %c704 = arith.constant 704 : index
    %86 = vector.load %arg6[%c0_62, %c704] : memref<8x2048xf32, #tpu.memory_space<vmem>>, vector<8x64xf32>
    tpu.vector_store %arg6[%c0_62, %c704], %85 {strides = array<i32>} : memref<8x2048xf32, #tpu.memory_space<vmem>>, vector<8x64xf32>,
    %87 = vector.extract_strided_slice %26 {offsets = [0, 192], sizes = [8, 16], strides = [1, 1]} : vector<8x512xf32> to vector<8x16xf32>
    %c12 = arith.constant 12 : index
    %c0_63 = arith.constant 0 : index
    %c0_64 = arith.constant 0 : index
    %88 = vector.load %arg3[%c12, %c0_63, %c0_64] : memref<32x16x64xf32, #tpu.memory_space<vmem>>, vector<1x16x64xf32>
    %89 = vector.shape_cast %88 : vector<1x16x64xf32> to vector<16x64xf32>
    %cst_65 = arith.constant dense<0.000000e+00> : vector<8x64xf32>
    %90 = tpu.matmul %87, %89, %cst_65 {dimension_numbers = #tpu.dot_dimension_numbers<[1], [0], [0], [1], [0, 0, 1, 1], [], []>} : vector<8x16xf32>, vector<16x64xf32>, vector<8x64xf32> -> vector<8x64xf32>
    %c0_66 = arith.constant 0 : index
    %c768 = arith.constant 768 : index
    %91 = vector.load %arg6[%c0_66, %c768] : memref<8x2048xf32, #tpu.memory_space<vmem>>, vector<8x64xf32>
    tpu.vector_store %arg6[%c0_66, %c768], %90 {strides = array<i32>} : memref<8x2048xf32, #tpu.memory_space<vmem>>, vector<8x64xf32>,
    %92 = vector.extract_strided_slice %26 {offsets = [0, 208], sizes = [8, 16], strides = [1, 1]} : vector<8x512xf32> to vector<8x16xf32>
    %c13 = arith.constant 13 : index
    %c0_67 = arith.constant 0 : index
    %c0_68 = arith.constant 0 : index
    %93 = vector.load %arg3[%c13, %c0_67, %c0_68] : memref<32x16x64xf32, #tpu.memory_space<vmem>>, vector<1x16x64xf32>
    %94 = vector.shape_cast %93 : vector<1x16x64xf32> to vector<16x64xf32>
    %cst_69 = arith.constant dense<0.000000e+00> : vector<8x64xf32>
    %95 = tpu.matmul %92, %94, %cst_69 {dimension_numbers = #tpu.dot_dimension_numbers<[1], [0], [0], [1], [0, 0, 1, 1], [], []>} : vector<8x16xf32>, vector<16x64xf32>, vector<8x64xf32> -> vector<8x64xf32>
    %c0_70 = arith.constant 0 : index
    %c832 = arith.constant 832 : index
    %96 = vector.load %arg6[%c0_70, %c832] : memref<8x2048xf32, #tpu.memory_space<vmem>>, vector<8x64xf32>
    tpu.vector_store %arg6[%c0_70, %c832], %95 {strides = array<i32>} : memref<8x2048xf32, #tpu.memory_space<vmem>>, vector<8x64xf32>,
    %97 = vector.extract_strided_slice %26 {offsets = [0, 224], sizes = [8, 16], strides = [1, 1]} : vector<8x512xf32> to vector<8x16xf32>
    %c14 = arith.constant 14 : index
    %c0_71 = arith.constant 0 : index
    %c0_72 = arith.constant 0 : index
    %98 = vector.load %arg3[%c14, %c0_71, %c0_72] : memref<32x16x64xf32, #tpu.memory_space<vmem>>, vector<1x16x64xf32>
    %99 = vector.shape_cast %98 : vector<1x16x64xf32> to vector<16x64xf32>
    %cst_73 = arith.constant dense<0.000000e+00> : vector<8x64xf32>
    %100 = tpu.matmul %97, %99, %cst_73 {dimension_numbers = #tpu.dot_dimension_numbers<[1], [0], [0], [1], [0, 0, 1, 1], [], []>} : vector<8x16xf32>, vector<16x64xf32>, vector<8x64xf32> -> vector<8x64xf32>
    %c0_74 = arith.constant 0 : index
    %c896 = arith.constant 896 : index
    %101 = vector.load %arg6[%c0_74, %c896] : memref<8x2048xf32, #tpu.memory_space<vmem>>, vector<8x64xf32>
    tpu.vector_store %arg6[%c0_74, %c896], %100 {strides = array<i32>} : memref<8x2048xf32, #tpu.memory_space<vmem>>, vector<8x64xf32>,
    %102 = vector.extract_strided_slice %26 {offsets = [0, 240], sizes = [8, 16], strides = [1, 1]} : vector<8x512xf32> to vector<8x16xf32>
    %c15 = arith.constant 15 : index
    %c0_75 = arith.constant 0 : index
    %c0_76 = arith.constant 0 : index
    %103 = vector.load %arg3[%c15, %c0_75, %c0_76] : memref<32x16x64xf32, #tpu.memory_space<vmem>>, vector<1x16x64xf32>
    %104 = vector.shape_cast %103 : vector<1x16x64xf32> to vector<16x64xf32>
    %cst_77 = arith.constant dense<0.000000e+00> : vector<8x64xf32>
    %105 = tpu.matmul %102, %104, %cst_77 {dimension_numbers = #tpu.dot_dimension_numbers<[1], [0], [0], [1], [0, 0, 1, 1], [], []>} : vector<8x16xf32>, vector<16x64xf32>, vector<8x64xf32> -> vector<8x64xf32>
    %c0_78 = arith.constant 0 : index
    %c960 = arith.constant 960 : index
    %106 = vector.load %arg6[%c0_78, %c960] : memref<8x2048xf32, #tpu.memory_space<vmem>>, vector<8x64xf32>
    tpu.vector_store %arg6[%c0_78, %c960], %105 {strides = array<i32>} : memref<8x2048xf32, #tpu.memory_space<vmem>>, vector<8x64xf32>,
    %107 = vector.extract_strided_slice %26 {offsets = [0, 256], sizes = [8, 16], strides = [1, 1]} : vector<8x512xf32> to vector<8x16xf32>
    %c16 = arith.constant 16 : index
    %c0_79 = arith.constant 0 : index
    %c0_80 = arith.constant 0 : index
    %108 = vector.load %arg3[%c16, %c0_79, %c0_80] : memref<32x16x64xf32, #tpu.memory_space<vmem>>, vector<1x16x64xf32>
    %109 = vector.shape_cast %108 : vector<1x16x64xf32> to vector<16x64xf32>
    %cst_81 = arith.constant dense<0.000000e+00> : vector<8x64xf32>
    %110 = tpu.matmul %107, %109, %cst_81 {dimension_numbers = #tpu.dot_dimension_numbers<[1], [0], [0], [1], [0, 0, 1, 1], [], []>} : vector<8x16xf32>, vector<16x64xf32>, vector<8x64xf32> -> vector<8x64xf32>
    %c0_82 = arith.constant 0 : index
    %c1024 = arith.constant 1024 : index
    %111 = vector.load %arg6[%c0_82, %c1024] : memref<8x2048xf32, #tpu.memory_space<vmem>>, vector<8x64xf32>
    tpu.vector_store %arg6[%c0_82, %c1024], %110 {strides = array<i32>} : memref<8x2048xf32, #tpu.memory_space<vmem>>, vector<8x64xf32>,
    %112 = vector.extract_strided_slice %26 {offsets = [0, 272], sizes = [8, 16], strides = [1, 1]} : vector<8x512xf32> to vector<8x16xf32>
    %c17 = arith.constant 17 : index
    %c0_83 = arith.constant 0 : index
    %c0_84 = arith.constant 0 : index
    %113 = vector.load %arg3[%c17, %c0_83, %c0_84] : memref<32x16x64xf32, #tpu.memory_space<vmem>>, vector<1x16x64xf32>
    %114 = vector.shape_cast %113 : vector<1x16x64xf32> to vector<16x64xf32>
    %cst_85 = arith.constant dense<0.000000e+00> : vector<8x64xf32>
    %115 = tpu.matmul %112, %114, %cst_85 {dimension_numbers = #tpu.dot_dimension_numbers<[1], [0], [0], [1], [0, 0, 1, 1], [], []>} : vector<8x16xf32>, vector<16x64xf32>, vector<8x64xf32> -> vector<8x64xf32>
    %c0_86 = arith.constant 0 : index
    %c1088 = arith.constant 1088 : index
    %116 = vector.load %arg6[%c0_86, %c1088] : memref<8x2048xf32, #tpu.memory_space<vmem>>, vector<8x64xf32>
    tpu.vector_store %arg6[%c0_86, %c1088], %115 {strides = array<i32>} : memref<8x2048xf32, #tpu.memory_space<vmem>>, vector<8x64xf32>,
    %117 = vector.extract_strided_slice %26 {offsets = [0, 288], sizes = [8, 16], strides = [1, 1]} : vector<8x512xf32> to vector<8x16xf32>
    %c18 = arith.constant 18 : index
    %c0_87 = arith.constant 0 : index
    %c0_88 = arith.constant 0 : index
    %118 = vector.load %arg3[%c18, %c0_87, %c0_88] : memref<32x16x64xf32, #tpu.memory_space<vmem>>, vector<1x16x64xf32>
    %119 = vector.shape_cast %118 : vector<1x16x64xf32> to vector<16x64xf32>
    %cst_89 = arith.constant dense<0.000000e+00> : vector<8x64xf32>
    %120 = tpu.matmul %117, %119, %cst_89 {dimension_numbers = #tpu.dot_dimension_numbers<[1], [0], [0], [1], [0, 0, 1, 1], [], []>} : vector<8x16xf32>, vector<16x64xf32>, vector<8x64xf32> -> vector<8x64xf32>
    %c0_90 = arith.constant 0 : index
    %c1152 = arith.constant 1152 : index
    %121 = vector.load %arg6[%c0_90, %c1152] : memref<8x2048xf32, #tpu.memory_space<vmem>>, vector<8x64xf32>
    tpu.vector_store %arg6[%c0_90, %c1152], %120 {strides = array<i32>} : memref<8x2048xf32, #tpu.memory_space<vmem>>, vector<8x64xf32>,
    %122 = vector.extract_strided_slice %26 {offsets = [0, 304], sizes = [8, 16], strides = [1, 1]} : vector<8x512xf32> to vector<8x16xf32>
    %c19 = arith.constant 19 : index
    %c0_91 = arith.constant 0 : index
    %c0_92 = arith.constant 0 : index
    %123 = vector.load %arg3[%c19, %c0_91, %c0_92] : memref<32x16x64xf32, #tpu.memory_space<vmem>>, vector<1x16x64xf32>
    %124 = vector.shape_cast %123 : vector<1x16x64xf32> to vector<16x64xf32>
    %cst_93 = arith.constant dense<0.000000e+00> : vector<8x64xf32>
    %125 = tpu.matmul %122, %124, %cst_93 {dimension_numbers = #tpu.dot_dimension_numbers<[1], [0], [0], [1], [0, 0, 1, 1], [], []>} : vector<8x16xf32>, vector<16x64xf32>, vector<8x64xf32> -> vector<8x64xf32>
    %c0_94 = arith.constant 0 : index
    %c1216 = arith.constant 1216 : index
    %126 = vector.load %arg6[%c0_94, %c1216] : memref<8x2048xf32, #tpu.memory_space<vmem>>, vector<8x64xf32>
    tpu.vector_store %arg6[%c0_94, %c1216], %125 {strides = array<i32>} : memref<8x2048xf32, #tpu.memory_space<vmem>>, vector<8x64xf32>,
    %127 = vector.extract_strided_slice %26 {offsets = [0, 320], sizes = [8, 16], strides = [1, 1]} : vector<8x512xf32> to vector<8x16xf32>
    %c20 = arith.constant 20 : index
    %c0_95 = arith.constant 0 : index
    %c0_96 = arith.constant 0 : index
    %128 = vector.load %arg3[%c20, %c0_95, %c0_96] : memref<32x16x64xf32, #tpu.memory_space<vmem>>, vector<1x16x64xf32>
    %129 = vector.shape_cast %128 : vector<1x16x64xf32> to vector<16x64xf32>
    %cst_97 = arith.constant dense<0.000000e+00> : vector<8x64xf32>
    %130 = tpu.matmul %127, %129, %cst_97 {dimension_numbers = #tpu.dot_dimension_numbers<[1], [0], [0], [1], [0, 0, 1, 1], [], []>} : vector<8x16xf32>, vector<16x64xf32>, vector<8x64xf32> -> vector<8x64xf32>
    %c0_98 = arith.constant 0 : index
    %c1280 = arith.constant 1280 : index
    %131 = vector.load %arg6[%c0_98, %c1280] : memref<8x2048xf32, #tpu.memory_space<vmem>>, vector<8x64xf32>
    tpu.vector_store %arg6[%c0_98, %c1280], %130 {strides = array<i32>} : memref<8x2048xf32, #tpu.memory_space<vmem>>, vector<8x64xf32>,
    %132 = vector.extract_strided_slice %26 {offsets = [0, 336], sizes = [8, 16], strides = [1, 1]} : vector<8x512xf32> to vector<8x16xf32>
    %c21 = arith.constant 21 : index
    %c0_99 = arith.constant 0 : index
    %c0_100 = arith.constant 0 : index
    %133 = vector.load %arg3[%c21, %c0_99, %c0_100] : memref<32x16x64xf32, #tpu.memory_space<vmem>>, vector<1x16x64xf32>
    %134 = vector.shape_cast %133 : vector<1x16x64xf32> to vector<16x64xf32>
    %cst_101 = arith.constant dense<0.000000e+00> : vector<8x64xf32>
    %135 = tpu.matmul %132, %134, %cst_101 {dimension_numbers = #tpu.dot_dimension_numbers<[1], [0], [0], [1], [0, 0, 1, 1], [], []>} : vector<8x16xf32>, vector<16x64xf32>, vector<8x64xf32> -> vector<8x64xf32>
    %c0_102 = arith.constant 0 : index
    %c1344 = arith.constant 1344 : index
    %136 = vector.load %arg6[%c0_102, %c1344] : memref<8x2048xf32, #tpu.memory_space<vmem>>, vector<8x64xf32>
    tpu.vector_store %arg6[%c0_102, %c1344], %135 {strides = array<i32>} : memref<8x2048xf32, #tpu.memory_space<vmem>>, vector<8x64xf32>,
    %137 = vector.extract_strided_slice %26 {offsets = [0, 352], sizes = [8, 16], strides = [1, 1]} : vector<8x512xf32> to vector<8x16xf32>
    %c22 = arith.constant 22 : index
    %c0_103 = arith.constant 0 : index
    %c0_104 = arith.constant 0 : index
    %138 = vector.load %arg3[%c22, %c0_103, %c0_104] : memref<32x16x64xf32, #tpu.memory_space<vmem>>, vector<1x16x64xf32>
    %139 = vector.shape_cast %138 : vector<1x16x64xf32> to vector<16x64xf32>
    %cst_105 = arith.constant dense<0.000000e+00> : vector<8x64xf32>
    %140 = tpu.matmul %137, %139, %cst_105 {dimension_numbers = #tpu.dot_dimension_numbers<[1], [0], [0], [1], [0, 0, 1, 1], [], []>} : vector<8x16xf32>, vector<16x64xf32>, vector<8x64xf32> -> vector<8x64xf32>
    %c0_106 = arith.constant 0 : index
    %c1408 = arith.constant 1408 : index
    %141 = vector.load %arg6[%c0_106, %c1408] : memref<8x2048xf32, #tpu.memory_space<vmem>>, vector<8x64xf32>
    tpu.vector_store %arg6[%c0_106, %c1408], %140 {strides = array<i32>} : memref<8x2048xf32, #tpu.memory_space<vmem>>, vector<8x64xf32>,
    %142 = vector.extract_strided_slice %26 {offsets = [0, 368], sizes = [8, 16], strides = [1, 1]} : vector<8x512xf32> to vector<8x16xf32>
    %c23 = arith.constant 23 : index
    %c0_107 = arith.constant 0 : index
    %c0_108 = arith.constant 0 : index
    %143 = vector.load %arg3[%c23, %c0_107, %c0_108] : memref<32x16x64xf32, #tpu.memory_space<vmem>>, vector<1x16x64xf32>
    %144 = vector.shape_cast %143 : vector<1x16x64xf32> to vector<16x64xf32>
    %cst_109 = arith.constant dense<0.000000e+00> : vector<8x64xf32>
    %145 = tpu.matmul %142, %144, %cst_109 {dimension_numbers = #tpu.dot_dimension_numbers<[1], [0], [0], [1], [0, 0, 1, 1], [], []>} : vector<8x16xf32>, vector<16x64xf32>, vector<8x64xf32> -> vector<8x64xf32>
    %c0_110 = arith.constant 0 : index
    %c1472 = arith.constant 1472 : index
    %146 = vector.load %arg6[%c0_110, %c1472] : memref<8x2048xf32, #tpu.memory_space<vmem>>, vector<8x64xf32>
    tpu.vector_store %arg6[%c0_110, %c1472], %145 {strides = array<i32>} : memref<8x2048xf32, #tpu.memory_space<vmem>>, vector<8x64xf32>,
    %147 = vector.extract_strided_slice %26 {offsets = [0, 384], sizes = [8, 16], strides = [1, 1]} : vector<8x512xf32> to vector<8x16xf32>
    %c24 = arith.constant 24 : index
    %c0_111 = arith.constant 0 : index
    %c0_112 = arith.constant 0 : index
    %148 = vector.load %arg3[%c24, %c0_111, %c0_112] : memref<32x16x64xf32, #tpu.memory_space<vmem>>, vector<1x16x64xf32>
    %149 = vector.shape_cast %148 : vector<1x16x64xf32> to vector<16x64xf32>
    %cst_113 = arith.constant dense<0.000000e+00> : vector<8x64xf32>
    %150 = tpu.matmul %147, %149, %cst_113 {dimension_numbers = #tpu.dot_dimension_numbers<[1], [0], [0], [1], [0, 0, 1, 1], [], []>} : vector<8x16xf32>, vector<16x64xf32>, vector<8x64xf32> -> vector<8x64xf32>
    %c0_114 = arith.constant 0 : index
    %c1536 = arith.constant 1536 : index
    %151 = vector.load %arg6[%c0_114, %c1536] : memref<8x2048xf32, #tpu.memory_space<vmem>>, vector<8x64xf32>
    tpu.vector_store %arg6[%c0_114, %c1536], %150 {strides = array<i32>} : memref<8x2048xf32, #tpu.memory_space<vmem>>, vector<8x64xf32>,
    %152 = vector.extract_strided_slice %26 {offsets = [0, 400], sizes = [8, 16], strides = [1, 1]} : vector<8x512xf32> to vector<8x16xf32>
    %c25 = arith.constant 25 : index
    %c0_115 = arith.constant 0 : index
    %c0_116 = arith.constant 0 : index
    %153 = vector.load %arg3[%c25, %c0_115, %c0_116] : memref<32x16x64xf32, #tpu.memory_space<vmem>>, vector<1x16x64xf32>
    %154 = vector.shape_cast %153 : vector<1x16x64xf32> to vector<16x64xf32>
    %cst_117 = arith.constant dense<0.000000e+00> : vector<8x64xf32>
    %155 = tpu.matmul %152, %154, %cst_117 {dimension_numbers = #tpu.dot_dimension_numbers<[1], [0], [0], [1], [0, 0, 1, 1], [], []>} : vector<8x16xf32>, vector<16x64xf32>, vector<8x64xf32> -> vector<8x64xf32>
    %c0_118 = arith.constant 0 : index
    %c1600 = arith.constant 1600 : index
    %156 = vector.load %arg6[%c0_118, %c1600] : memref<8x2048xf32, #tpu.memory_space<vmem>>, vector<8x64xf32>
    tpu.vector_store %arg6[%c0_118, %c1600], %155 {strides = array<i32>} : memref<8x2048xf32, #tpu.memory_space<vmem>>, vector<8x64xf32>,
    %157 = vector.extract_strided_slice %26 {offsets = [0, 416], sizes = [8, 16], strides = [1, 1]} : vector<8x512xf32> to vector<8x16xf32>
    %c26 = arith.constant 26 : index
    %c0_119 = arith.constant 0 : index
    %c0_120 = arith.constant 0 : index
    %158 = vector.load %arg3[%c26, %c0_119, %c0_120] : memref<32x16x64xf32, #tpu.memory_space<vmem>>, vector<1x16x64xf32>
    %159 = vector.shape_cast %158 : vector<1x16x64xf32> to vector<16x64xf32>
    %cst_121 = arith.constant dense<0.000000e+00> : vector<8x64xf32>
    %160 = tpu.matmul %157, %159, %cst_121 {dimension_numbers = #tpu.dot_dimension_numbers<[1], [0], [0], [1], [0, 0, 1, 1], [], []>} : vector<8x16xf32>, vector<16x64xf32>, vector<8x64xf32> -> vector<8x64xf32>
    %c0_122 = arith.constant 0 : index
    %c1664 = arith.constant 1664 : index
    %161 = vector.load %arg6[%c0_122, %c1664] : memref<8x2048xf32, #tpu.memory_space<vmem>>, vector<8x64xf32>
    tpu.vector_store %arg6[%c0_122, %c1664], %160 {strides = array<i32>} : memref<8x2048xf32, #tpu.memory_space<vmem>>, vector<8x64xf32>,
    %162 = vector.extract_strided_slice %26 {offsets = [0, 432], sizes = [8, 16], strides = [1, 1]} : vector<8x512xf32> to vector<8x16xf32>
    %c27 = arith.constant 27 : index
    %c0_123 = arith.constant 0 : index
    %c0_124 = arith.constant 0 : index
    %163 = vector.load %arg3[%c27, %c0_123, %c0_124] : memref<32x16x64xf32, #tpu.memory_space<vmem>>, vector<1x16x64xf32>
    %164 = vector.shape_cast %163 : vector<1x16x64xf32> to vector<16x64xf32>
    %cst_125 = arith.constant dense<0.000000e+00> : vector<8x64xf32>
    %165 = tpu.matmul %162, %164, %cst_125 {dimension_numbers = #tpu.dot_dimension_numbers<[1], [0], [0], [1], [0, 0, 1, 1], [], []>} : vector<8x16xf32>, vector<16x64xf32>, vector<8x64xf32> -> vector<8x64xf32>
    %c0_126 = arith.constant 0 : index
    %c1728 = arith.constant 1728 : index
    %166 = vector.load %arg6[%c0_126, %c1728] : memref<8x2048xf32, #tpu.memory_space<vmem>>, vector<8x64xf32>
    tpu.vector_store %arg6[%c0_126, %c1728], %165 {strides = array<i32>} : memref<8x2048xf32, #tpu.memory_space<vmem>>, vector<8x64xf32>,
    %167 = vector.extract_strided_slice %26 {offsets = [0, 448], sizes = [8, 16], strides = [1, 1]} : vector<8x512xf32> to vector<8x16xf32>
    %c28 = arith.constant 28 : index
    %c0_127 = arith.constant 0 : index
    %c0_128 = arith.constant 0 : index
    %168 = vector.load %arg3[%c28, %c0_127, %c0_128] : memref<32x16x64xf32, #tpu.memory_space<vmem>>, vector<1x16x64xf32>
    %169 = vector.shape_cast %168 : vector<1x16x64xf32> to vector<16x64xf32>
    %cst_129 = arith.constant dense<0.000000e+00> : vector<8x64xf32>
    %170 = tpu.matmul %167, %169, %cst_129 {dimension_numbers = #tpu.dot_dimension_numbers<[1], [0], [0], [1], [0, 0, 1, 1], [], []>} : vector<8x16xf32>, vector<16x64xf32>, vector<8x64xf32> -> vector<8x64xf32>
    %c0_130 = arith.constant 0 : index
    %c1792 = arith.constant 1792 : index
    %171 = vector.load %arg6[%c0_130, %c1792] : memref<8x2048xf32, #tpu.memory_space<vmem>>, vector<8x64xf32>
    tpu.vector_store %arg6[%c0_130, %c1792], %170 {strides = array<i32>} : memref<8x2048xf32, #tpu.memory_space<vmem>>, vector<8x64xf32>,
    %172 = vector.extract_strided_slice %26 {offsets = [0, 464], sizes = [8, 16], strides = [1, 1]} : vector<8x512xf32> to vector<8x16xf32>
    %c29 = arith.constant 29 : index
    %c0_131 = arith.constant 0 : index
    %c0_132 = arith.constant 0 : index
    %173 = vector.load %arg3[%c29, %c0_131, %c0_132] : memref<32x16x64xf32, #tpu.memory_space<vmem>>, vector<1x16x64xf32>
    %174 = vector.shape_cast %173 : vector<1x16x64xf32> to vector<16x64xf32>
    %cst_133 = arith.constant dense<0.000000e+00> : vector<8x64xf32>
    %175 = tpu.matmul %172, %174, %cst_133 {dimension_numbers = #tpu.dot_dimension_numbers<[1], [0], [0], [1], [0, 0, 1, 1], [], []>} : vector<8x16xf32>, vector<16x64xf32>, vector<8x64xf32> -> vector<8x64xf32>
    %c0_134 = arith.constant 0 : index
    %c1856 = arith.constant 1856 : index
    %176 = vector.load %arg6[%c0_134, %c1856] : memref<8x2048xf32, #tpu.memory_space<vmem>>, vector<8x64xf32>
    tpu.vector_store %arg6[%c0_134, %c1856], %175 {strides = array<i32>} : memref<8x2048xf32, #tpu.memory_space<vmem>>, vector<8x64xf32>,
    %177 = vector.extract_strided_slice %26 {offsets = [0, 480], sizes = [8, 16], strides = [1, 1]} : vector<8x512xf32> to vector<8x16xf32>
    %c30 = arith.constant 30 : index
    %c0_135 = arith.constant 0 : index
    %c0_136 = arith.constant 0 : index
    %178 = vector.load %arg3[%c30, %c0_135, %c0_136] : memref<32x16x64xf32, #tpu.memory_space<vmem>>, vector<1x16x64xf32>
    %179 = vector.shape_cast %178 : vector<1x16x64xf32> to vector<16x64xf32>
    %cst_137 = arith.constant dense<0.000000e+00> : vector<8x64xf32>
    %180 = tpu.matmul %177, %179, %cst_137 {dimension_numbers = #tpu.dot_dimension_numbers<[1], [0], [0], [1], [0, 0, 1, 1], [], []>} : vector<8x16xf32>, vector<16x64xf32>, vector<8x64xf32> -> vector<8x64xf32>
    %c0_138 = arith.constant 0 : index
    %c1920 = arith.constant 1920 : index
    %181 = vector.load %arg6[%c0_138, %c1920] : memref<8x2048xf32, #tpu.memory_space<vmem>>, vector<8x64xf32>
    tpu.vector_store %arg6[%c0_138, %c1920], %180 {strides = array<i32>} : memref<8x2048xf32, #tpu.memory_space<vmem>>, vector<8x64xf32>,
    %182 = vector.extract_strided_slice %26 {offsets = [0, 496], sizes = [8, 16], strides = [1, 1]} : vector<8x512xf32> to vector<8x16xf32>
    %c31 = arith.constant 31 : index
    %c0_139 = arith.constant 0 : index
    %c0_140 = arith.constant 0 : index
    %183 = vector.load %arg3[%c31, %c0_139, %c0_140] : memref<32x16x64xf32, #tpu.memory_space<vmem>>, vector<1x16x64xf32>
    %184 = vector.shape_cast %183 : vector<1x16x64xf32> to vector<16x64xf32>
    %cst_141 = arith.constant dense<0.000000e+00> : vector<8x64xf32>
    %185 = tpu.matmul %182, %184, %cst_141 {dimension_numbers = #tpu.dot_dimension_numbers<[1], [0], [0], [1], [0, 0, 1, 1], [], []>} : vector<8x16xf32>, vector<16x64xf32>, vector<8x64xf32> -> vector<8x64xf32>
    %c0_142 = arith.constant 0 : index
    %c1984 = arith.constant 1984 : index
    %186 = vector.load %arg6[%c0_142, %c1984] : memref<8x2048xf32, #tpu.memory_space<vmem>>, vector<8x64xf32>
    tpu.vector_store %arg6[%c0_142, %c1984], %185 {strides = array<i32>} : memref<8x2048xf32, #tpu.memory_space<vmem>>, vector<8x64xf32>,
    return
  }
  func.func @transform_0(%arg0: i32) -> (i32, i32) {
    %c0_i32 = arith.constant 0 : i32
    %c0_i32_0 = arith.constant 0 : i32
    %c0_i32_1 = arith.constant 0 : i32
    return %c0_i32, %c0_i32_0 : i32, i32
  }
  func.func @transform_1(%arg0: i32) -> (i32, i32) {
    %c0_i32 = arith.constant 0 : i32
    %c0_i32_0 = arith.constant 0 : i32
    %c0_i32_1 = arith.constant 0 : i32
    return %c0_i32, %c0_i32_0 : i32, i32
  }
  func.func @transform_2(%arg0: i32) -> (i32, i32, i32) {
    %c0_i32 = arith.constant 0 : i32
    %c0_i32_0 = arith.constant 0 : i32
    %c0_i32_1 = arith.constant 0 : i32
    %c0_i32_2 = arith.constant 0 : i32
    return %c0_i32, %c0_i32_0, %c0_i32_1 : i32, i32, i32
  }
  func.func @transform_3(%arg0: i32) -> (i32, i32) {
    %c0_i32 = arith.constant 0 : i32
    %c0_i32_0 = arith.constant 0 : i32
    %c0_i32_1 = arith.constant 0 : i32
    return %c0_i32, %c0_i32_0 : i32, i32
  }
  func.func @transform_4(%arg0: i32) -> (i32, i32) {
    %c0_i32 = arith.constant 0 : i32
    %c0_i32_0 = arith.constant 0 : i32
    %c0_i32_1 = arith.constant 0 : i32
    return %c0_i32, %c0_i32_0 : i32, i32
  }
  func.func @transform_5(%arg0: i32) -> (i32, i32) {
    %c0_i32 = arith.constant 0 : i32
    %c0_i32_0 = arith.constant 0 : i32
    %c0_i32_1 = arith.constant 0 : i32
    return %c0_i32, %c0_i32_0 : i32, i32
  }
}

</mosaic_0001>

<bundles_post_ra>
// kernel: _moe_forward.1
= control target key start
LH: loop header
LB: loop body
LE: loop exit
PB: predicated region body
PF: predicated region fallthrough
CT: control target
= control target key end

     0   :  { %11 = vsyncpa [#allocation3], 0  ;;  %s3816_s0 = inlined_call_operand.hbm [shape: f32[8,32], index: 0, kind: input, shape index: {}]   ;;  %s3817_s1 = inlined_call_operand.hbm [shape: f32[32,512], index: 1, kind: input, shape index: {}]   ;;  %s3818_s2 = inlined_call_operand.hbm [shape: f32[32,16,64], index: 2, kind: input, shape index: {}]   ;;  %s3819_s3 = inlined_call_operand.vmem [shape: f32[1,32], index: 3, kind: input, shape index: {}]   ;;  %s3820_s4 = inlined_call_operand.vmem [shape: f32[8,1], index: 4, kind: output, shape index: {0}]   ;;  %s3821_s5 = inlined_call_operand.vmem [shape: f32[8,2048], index: 5, kind: output, shape index: {1}]  }
   0x1   :  { %12 = vsyncpa [#allocation5], 0  ;;  %s3377_s18 = smov [#allocation4]   ;;  %s3307_s22 = scalar_lea.hbm %s3817_s1, 2048 }
   0x2   :  { %s28_s19 = sshll.u32 %s3377_s18, 4  ;;  %p3308_p0 = scmp.ne.s32.totalorder %s3817_s1, %s3307_s22  ;;  %s29_s19 = int_to_ptr.vmem [resolvable:$true] %s28_s19 }
   0x3   :  { %p3311_p1 = scmp.lt.u32.totalorder %s3307_s22, %s3817_s1 }
   0x5   :  { %p3313_p2 = pnand %p3311_p1, %p3308_p0 }
   0x7   :  { %3316 = shalt.err (!%p3313_p2)
}
   0x8   :  { %s3317_s27 = scalar_lea.vmem %s29_s19, 2048  ;;  %p3322_p4 = scmp.lt.s32.totalorder %s29_s19, %s29_s19 }
   0x9   :  { %p3318_p3 = scmp.ne.s32.totalorder %s29_s19, %s3317_s27  ;;  %p3323_p5 = scmp.lt.s32.totalorder %s3317_s27, %s3317_s27 }
   0xb   :  { %p3324_p6 = por %p3323_p5, %p3322_p4 }
   0xd   :  { %p3325_p7 = pnand %p3324_p6, %p3318_p3 }
   0xf   :  { %3328 = shalt.err (!%p3325_p7)
}
  0x10   :  { %s3378_s28 = smov 512   ;;  %s3379_s29 = smov 32  }
  0x11   :  { %34 = dma.hbm_to_vmem [thread:$0]  %s3817_s1, 2048, %s29_s19, [#allocation5], %s3378_s28, %s3378_s28, %s3379_s29  }
  0x12   :  { %s3380_s7 = smov [#allocation2]   ;;  %s3381_s9 = smov [#allocation6]  }
  0x13   :  { %s19_s8 = sshll.u32 %s3380_s7, 4  ;;  %s40_s10 = sshll.u32 %s3381_s9, 4  ;;  %s20_s8 = int_to_ptr.vmem [resolvable:$true] %s19_s8  ;;  %s41_s10 = int_to_ptr.vmem [resolvable:$true] %s40_s10 }
  0x14   :  { %s3329_s13 = scalar_lea.hbm %s3816_s0, 128 }
  0x15   :  { %p3330_p8 = scmp.ne.s32.totalorder %s3816_s0, %s3329_s13  ;;  %p3333_p9 = scmp.lt.u32.totalorder %s3329_s13, %s3816_s0 }
  0x17   :  { %p3335_p10 = pnand %p3333_p9, %p3330_p8 }
  0x19   :  { %3338 = shalt.err (!%p3335_p10)
}
  0x1a   :  { %s3339_s1 = scalar_lea.vmem %s20_s8, 128  ;;  %p3344_p12 = scmp.lt.s32.totalorder %s20_s8, %s20_s8 }
  0x1b   :  { %p3340_p11 = scmp.ne.s32.totalorder %s20_s8, %s3339_s1  ;;  %p3345_p13 = scmp.lt.s32.totalorder %s3339_s1, %s3339_s1 }
  0x1d   :  { %p3346_p0 = por %p3345_p13, %p3344_p12 }
  0x1f   :  { %p3347_p1 = pnand %p3346_p0, %p3340_p11 }
  0x21   :  { %3350 = shalt.err (!%p3347_p1)
}
  0x22   :  { %22 = dma.hbm_to_vmem [thread:$0]  %s3816_s0, 128, %s20_s8, [#allocation3]  }
  0x23   :  { %s3351_s22 = scalar_lea.hbm %s3818_s2, 8192 }
  0x24   :  { %p3352_p2 = scmp.ne.s32.totalorder %s3818_s2, %s3351_s22  ;;  %p3355_p3 = scmp.lt.u32.totalorder %s3351_s22, %s3818_s2 }
  0x26   :  { %p3357_p4 = pnand %p3355_p3, %p3352_p2 }
  0x28   :  { %3360 = shalt.err (!%p3357_p4)
}
  0x29   :  { %s3361_s27 = scalar_lea.vmem %s41_s10, 8192  ;;  %p3366_p6 = scmp.lt.s32.totalorder %s41_s10, %s41_s10 }
  0x2a   :  { %p3362_p5 = scmp.ne.s32.totalorder %s41_s10, %s3361_s27  ;;  %p3367_p7 = scmp.lt.s32.totalorder %s3361_s27, %s3361_s27 }
  0x2c   :  { %p3368_p8 = por %p3367_p7, %p3366_p6 }
  0x2e   :  { %p3369_p9 = pnand %p3368_p8, %p3362_p5 }
  0x30   :  { %3372 = shalt.err (!%p3369_p9)
}
  0x31   :  { %s3382_s0 = smov 128   ;;  %s3383_s28 = smov 8  }
  0x32   :  { %46 = dma.hbm_to_vmem [thread:$0]  %s3818_s2, 8192, %s41_s10, [#allocation5], %s3382_s0, %s3382_s0, %s3383_s28  }
  0x33   :  { %3373 = dma.done.wait [#allocation3], 128  }
  0x34   :  { %3374 = vsyncadd [#allocation3], 4294967168 }
  0x35   :  { %3375 = dma.done.wait [#allocation5], 10240  }
  0x36   :  { %3376 = vsyncadd [#allocation5], 4294957056  ;;  %v3384_v0 = vmov 0.0   ;;  %v89_v1 = vld [vmem:[#allocation4 + $0x8] sm:$0xff]  ;;  %v88_v3 = vld [vmem:[#allocation4] sm:$0xff]  ;;  %vm60_vm0 = vcmask 261120  }
  0x37   :  { %171 = vmatprep.mubr.f32.mxu0 %v3384_v0  ;;  %242 = vmatprep.mubr.f32.mxu1 %v3384_v0  ;;  %v93_v2 = vld [vmem:[#allocation4 + $0x28] sm:$0xff]  ;;  %v92_v5 = vld [vmem:[#allocation4 + $0x20] sm:$0xff]  ;;  %v91_v12 = vld [vmem:[#allocation4 + $0x18] sm:$0xff]  ;;  %v3385_v26 = vmov 0.0|0.0   ;;  %vm3386_vm1 = vmmov 0   ;;  %vm255_vm2 = vcmask 130048  }
  0x38   :  { %v3175_v4 = vpack.c.bf16 %v93_v2, %v89_v1  ;;  %v97_v6 = vld [vmem:[#allocation4 + $0x48] sm:$0xff]  ;;  %v3177_v8 = vpack.c.bf16 %v92_v5, %v88_v3  ;;  %v96_v10 = vld [vmem:[#allocation4 + $0x40] sm:$0xff]  ;;  %v95_v13 = vld [vmem:[#allocation4 + $0x38] sm:$0xff]  ;;  %s3387_s2 = smov 48   ;;  %s3388_s7 = smov 112   ;;  %vm69_vm3 = vcmask 253952  }
  0x39   :  { %v101_v7 = vld [vmem:[#allocation4 + $0x68] sm:$0xff]  ;;  %v100_v11 = vld [vmem:[#allocation4 + $0x60] sm:$0xff]  ;;  %v90_v14 = vld [vmem:[#allocation4 + $0x10] sm:$0xff]  ;;  %v3183_v16 = vpack.c.bf16 %v95_v13, %v91_v12  ;;  %s3389_s8 = smov 16   ;;  %s3390_s9 = smov 80   ;;  %vm329_vm4 = vcmask 523264  }
  0x3a   :  { %v3179_v9 = vpack.c.bf16 %v101_v7, %v97_v6  ;;  %3176 = vmatprep.subr.bf16.mxu0 %v3175_v4  ;;  %v3181_v15 = vpack.c.bf16 %v100_v11, %v96_v10  ;;  %v94_v17 = vld [vmem:[#allocation4 + $0x30] sm:$0xff]  ;;  %v99_v18 = vld [vmem:[#allocation4 + $0x58] sm:$0xff]  ;;  %v253_v27 = vld [vmem:[#allocation6] sm:$0xff]  ;;  %s3391_s10 = smov 64   ;;  %s3392_s11 = smov 96   ;;  %vm86_vm5 = vcmask 7168  }
  0x3b   :  { %3178 = vmatpush1.bf16.msra.mxu0 %v3177_v8  ;;  %v103_v19 = vld [vmem:[#allocation4 + $0x78] sm:$0xff]  ;;  %v3185_v20 = vpack.c.bf16 %v94_v17, %v90_v14  ;;  %v98_v22 = vld [vmem:[#allocation4 + $0x50] sm:$0xff]  ;;  %3184 = vmatprep.subr.bf16.mxu1 %v3183_v16  ;;  %v254_v28 = vld [vmem:[#allocation6 + $0x8] sm:$0xff]  ;;  %vm412_vm6 = vcmask 1048064  }
  0x3c   :  { %3180 = vmatprep.subr.bf16.mxu0 %v3179_v9  ;;  %v3187_v21 = vpack.c.bf16 %v103_v19, %v99_v18  ;;  %v102_v23 = vld [vmem:[#allocation4 + $0x70] sm:$0xff]  ;;  %v3462_v25 = vld [vmem:[#allocation2] sm:$0xff]  ;;  %v3192_v29 = vpack.c.bf16 %v254_v28, %v253_v27  ;;  %v415_v40 = vld [vmem:[#allocation6 + $0x20] sm:$0xff] }
  0x3d   :  { %3186 = vmatpush1.bf16.msra.mxu1 %v3185_v20  ;;  %v3189_v24 = vpack.c.bf16 %v102_v23, %v98_v22  ;;  %v332_v30 = vld [vmem:[#allocation6 + $0x10] sm:$0xff]  ;;  %v333_v31 = vld [vmem:[#allocation6 + $0x18] sm:$0xff]  ;;  %v416_v41 = vld [vmem:[#allocation6 + $0x28] sm:$0xff]  ;;  %v59_v47 = vmul.f32 %v3462_v25, %v3462_v25 }
  0x3e   :  { %3188 = vmatprep.subr.bf16.mxu1 %v3187_v21  ;;  %v3195_v32 = vpack.c.bf16 %v333_v31, %v332_v30  ;;  %v3198_v42 = vpack.c.bf16 %v416_v41, %v415_v40  ;;  %v3522_v44 = vld [vmem:[%s3819_s3] sm:$0x1]  ;;  %v494_v50 = vld [vmem:[#allocation6 + $0x38] sm:$0xff]  ;;  %v575_v28 = vld [vmem:[#allocation6 + $0x40] sm:$0xff] }
  0x3f   :  { %3182 = vmatpush1.bf16.msra.mxu0 %v3181_v15  ;;  %v68_v45 = vmul.f32 %v3522_v44, %v3522_v44  ;;  %v61_v48 = vsel %vm60_vm0, %v59_v47, 0.0  ;;  %v493_v49 = vld [vmem:[#allocation6 + $0x30] sm:$0xff]  ;;  %v654_v53 = vld [vmem:[#allocation6 + $0x58] sm:$0xff]  ;;  %v895_v47 = vld [vmem:[#allocation6 + $0x80] sm:$0xff] }
  0x40   :  { %3191 = vmatprep.subr.bf16.mxu0 %v3385_v26  ;;  %v3201_v51 = vpack.c.bf16 %v494_v50, %v493_v49  ;;  %v653_v52 = vld [vmem:[#allocation6 + $0x50] sm:$0xff]  ;;  %v814_v58 = vld [vmem:[#allocation6 + $0x78] sm:$0xff] }
  0x41   :  { %3190 = vmatpush1.bf16.msra.mxu1 %v3189_v24  ;;  %v70_v46 = vsel %vm69_vm3, %v68_v45, 0.0  ;;  %v3207_v56 = vpack.c.bf16 %v654_v53, %v653_v52  ;;  %v813_v57 = vld [vmem:[#allocation6 + $0x70] sm:$0xff]  ;;  %v973_v63 = vld [vmem:[#allocation6 + $0x98] sm:$0xff] }
  0x42   :  { %2821 = vmatmul.mubr.msk.f32.vlgmr.msra.gmra.mrb[0].mxu0 %vm60_vm0, %v3462_v25  ;;  %3194 = vmatprep.subr.bf16.mxu1 %v3385_v26  ;;  %v3213_v61 = vpack.c.bf16 %v814_v58, %v813_v57  ;;  %v972_v62 = vld [vmem:[#allocation6 + $0x90] sm:$0xff]  ;;  %v1133_v5 = vld [vmem:[#allocation6 + $0xb8] sm:$0xff] }
  0x43   :  { %3193 = vmatpush3.bf16.msra.mxu0 %v3192_v29  ;;  %2955 = vmatprep.mubr.msk.f32.mxu0 %vm3386_vm1, %v3384_v0  ;;  %v3219_v3 = vpack.c.bf16 %v973_v63, %v972_v62  ;;  %v1132_v4 = vld [vmem:[#allocation6 + $0xb0] sm:$0xff]  ;;  %v1293_v10 = vld [vmem:[#allocation6 + $0xd8] sm:$0xff]  ;;  %v576_v29 = vld [vmem:[#allocation6 + $0x48] sm:$0xff] }
  0x44   :  { %2822 = vmatmul.mubr.msk.f32.vlgmr.msra.gmra.mrb[0].mxu1 %vm60_vm0, %v3462_v25  ;;  %3197 = vmatprep.subr.bf16.mxu0 %v3385_v26  ;;  %v3225_v8 = vpack.c.bf16 %v1133_v5, %v1132_v4  ;;  %v1292_v9 = vld [vmem:[#allocation6 + $0xd0] sm:$0xff]  ;;  %v1453_v15 = vld [vmem:[#allocation6 + $0xf8] sm:$0xff]  ;;  %v1215_v62 = vld [vmem:[#allocation6 + $0xc8] sm:$0xff] }
  0x45   :  { %2962 = vmatprep.mubr.msk.f32.mxu1 %vm3386_vm1, %v3384_v0  ;;  %3196 = vmatpush3.bf16.msra.mxu1 %v3195_v32  ;;  %v3231_v13 = vpack.c.bf16 %v1293_v10, %v1292_v9  ;;  %v1452_v14 = vld [vmem:[#allocation6 + $0xf0] sm:$0xff]  ;;  %v1612_v20 = vld [vmem:[#allocation6 + $0x118] sm:$0xff]  ;;  %v1374_v4 = vld [vmem:[#allocation6 + $0xe0] sm:$0xff] }
  0x46   :  { %3200 = vmatprep.subr.bf16.mxu1 %v3385_v26  ;;  %v3237_v18 = vpack.c.bf16 %v1453_v15, %v1452_v14  ;;  %v1611_v19 = vld [vmem:[#allocation6 + $0x110] sm:$0xff]  ;;  %v1772_v27 = vld [vmem:[#allocation6 + $0x138] sm:$0xff]  ;;  %v1375_v5 = vld [vmem:[#allocation6 + $0xe8] sm:$0xff] }
  0x47   :  { %v3243_v23 = vpack.c.bf16 %v1612_v20, %v1611_v19  ;;  %v1771_v24 = vld [vmem:[#allocation6 + $0x130] sm:$0xff]  ;;  %v2251_v53 = vld [vmem:[#allocation6 + $0x198] sm:$0xff]  ;;  %v1534_v10 = vld [vmem:[#allocation6 + $0x100] sm:$0xff] }
  0x48   :  { %v3249_v32 = vpack.c.bf16 %v1772_v27, %v1771_v24  ;;  %v2091_v45 = vld [vmem:[#allocation6 + $0x170] sm:$0xff]  ;;  %v2731_v9 = vld [vmem:[#allocation6 + $0x1f8] sm:$0xff]  ;;  %v1693_v15 = vld [vmem:[#allocation6 + $0x120] sm:$0xff] }
  0x49   :  { %v2250_v52 = vld [vmem:[#allocation6 + $0x190] sm:$0xff]  ;;  %v1853_v19 = vld [vmem:[#allocation6 + $0x140] sm:$0xff]  ;;  %v1854_v20 = vld [vmem:[#allocation6 + $0x148] sm:$0xff] }
  0x4a   :  { %v3267_v57 = vpack.c.bf16 %v2251_v53, %v2250_v52  ;;  %v2173_v27 = vld [vmem:[#allocation6 + $0x180] sm:$0xff] }
 0x115   :  { %v173_v33 = vpop.f32.mrb[0].mxu0 }
 0x116   :  { %v249_v34 = vmax.f32 %v173_v33, 0.0  ;;  %v175_v35 = vpop.f32.mrb[1].mxu0  ;;  %v3204_v33 = vpack.c.bf16 %v576_v29, %v575_v28  ;;  %v2174_v28 = vld [vmem:[#allocation6 + $0x188] sm:$0xff] }
 0x117   :  { %v244_v36 = vpop.f32.mrb[0].mxu1  ;;  %v3480_v38 = vmax.f32 %v175_v35, 0.0  ;;  %v1932_v35 = vld [vmem:[#allocation6 + $0x158] sm:$0xff] }
 0x118   :  { %655 = vrot.lane.b32.xlu1 %v249_v34, %s3387_s2  ;;  %334 = vrot.lane.b32.xlu0 %v249_v34, %s3388_s7  ;;  %v246_v37 = vpop.f32.mrb[1].mxu1  ;;  %v3487_v39 = vmax.f32 %v244_v36, 0.0  ;;  %v735_v36 = vld [vmem:[#allocation6 + $0x60] sm:$0xff] }
 0x119   :  { %2956 = vmatmul.mubr.msk.f32.vlgmr.msra.gmra.mrb[2].mxu0 %vm255_vm2, %v249_v34  ;;  %v3495_v43 = vmax.f32 %v246_v37, 0.0  ;;  %v736_v37 = vld [vmem:[#allocation6 + $0x68] sm:$0xff] }
 0x11a   :  { %2969 = vmatprep.mubr.msk.f32.mxu0 %vm3386_vm1, %v3384_v0  ;;  %3199 = vmatpush3.bf16.msra.mxu0 %v3198_v42  ;;  %v3210_v42 = vpack.c.bf16 %v736_v37, %v735_v36  ;;  %v2493_v36 = vld [vmem:[#allocation6 + $0x1c8] sm:$0xff] }
 0x11b   :  { %3203 = vmatprep.subr.bf16.mxu0 %v3385_v26 }
 0x11c   :  { %815 = vrot.lane.b32.xlu1 %v249_v34, %s3389_s8  ;;  %495 = vrot.lane.b32.xlu0 %v249_v34, %s3390_s9 }
 0x120   :  { %1134 = vrot.lane.b32.xlu1 %v3480_v38, %s3390_s9  ;;  %974 = vrot.lane.b32.xlu0 %v3480_v38, %s3388_s7 }
 0x124   :  { %1454 = vrot.lane.b32.xlu1 %v3480_v38, %s3389_s8  ;;  %1294 = vrot.lane.b32.xlu0 %v3480_v38, %s3387_s2 }
 0x128   :  { %1773 = vrot.lane.b32.xlu1 %v3487_v39, %s3390_s9  ;;  %1613 = vrot.lane.b32.xlu0 %v3487_v39, %s3388_s7 }
 0x12c   :  { %2093 = vrot.lane.b32.xlu1 %v3487_v39, %s3389_s8  ;;  %1933 = vrot.lane.b32.xlu0 %v3487_v39, %s3387_s2 }
 0x130   :  { %2412 = vrot.lane.b32.xlu1 %v3495_v43, %s3390_s9  ;;  %2252 = vrot.lane.b32.xlu0 %v3495_v43, %s3388_s7 }
 0x134   :  { %2732 = vrot.lane.b32.xlu1 %v3495_v43, %s3389_s8  ;;  %2572 = vrot.lane.b32.xlu0 %v3495_v43, %s3387_s2 }
 0x138   :  { %577 = vrot.lane.b32.xlu1 %v249_v34, %s3391_s10  ;;  %417 = vrot.lane.b32.xlu0 %v249_v34, %s3392_s11 }
 0x13c   :  { %1056 = vrot.lane.b32.xlu1 %v3480_v38, %s3392_s11  ;;  %737 = vrot.lane.b32.xlu0 %v249_v34, %s3379_s29  ;;  %v1931_v34 = vld [vmem:[#allocation6 + $0x150] sm:$0xff] }
 0x13d   :  { %v3255_v41 = vpack.c.bf16 %v1932_v35, %v1931_v34  ;;  %v2492_v35 = vld [vmem:[#allocation6 + $0x1c0] sm:$0xff] }
 0x13e   :  { %v3276_v37 = vpack.c.bf16 %v2493_v36, %v2492_v35 }
 0x140   :  { %1376 = vrot.lane.b32.xlu1 %v3480_v38, %s3379_s29  ;;  %1216 = vrot.lane.b32.xlu0 %v3480_v38, %s3391_s10 }
 0x144   :  { %1855 = vrot.lane.b32.xlu1 %v3487_v39, %s3391_s10  ;;  %1695 = vrot.lane.b32.xlu0 %v3487_v39, %s3392_s11 }
 0x148   :  { %2334 = vrot.lane.b32.xlu1 %v3495_v43, %s3392_s11  ;;  %2015 = vrot.lane.b32.xlu0 %v3487_v39, %s3379_s29 }
 0x14c   :  { %2654 = vrot.lane.b32.xlu1 %v3495_v43, %s3379_s29  ;;  %2494 = vrot.lane.b32.xlu0 %v3495_v43, %s3391_s10 }
 0x16b   :  { %71 = vadd.xlane.f32.xlu0 %v70_v46  ;;  %v2092_v46 = vld [vmem:[#allocation6 + $0x178] sm:$0xff] }
 0x16c   :  { %v3261_v50 = vpack.c.bf16 %v2092_v46, %v2091_v45 }
 0x170   :  { %62 = vadd.xlane.f32.xlu1 %v61_v48  ;;  %v896_v48 = vld [vmem:[#allocation6 + $0x88] sm:$0xff] }
 0x18a   :  { %v656_v54 = vpop.permute.xlu1 %655  ;;  %v335_v55 = vpop.permute.xlu0 %334 }
 0x18b   :  { %2963 = vmatmul.mubr.msk.f32.vlgmr.msra.gmra.mrb[2].mxu1 %vm255_vm2, %v335_v55  ;;  %v1055_v55 = vld [vmem:[#allocation6 + $0xa8] sm:$0xff] }
 0x18c   :  { %3202 = vmatpush3.bf16.msra.mxu1 %v3201_v51  ;;  %2976 = vmatprep.mubr.msk.f32.mxu1 %vm3386_vm1, %v3384_v0  ;;  %v3216_v51 = vpack.c.bf16 %v896_v48, %v895_v47 }
 0x18d   :  { %3206 = vmatprep.subr.bf16.mxu1 %v3385_v26 }
 0x18e   :  { %v816_v59 = vpop.permute.xlu1 %815  ;;  %v496_v60 = vpop.permute.xlu0 %495 }
 0x18f   :  { %2977 = vmatmul.mubr.msk.f32.vlgmr.msra.gmra.mrb[4].mxu1 %vm255_vm2, %v496_v60  ;;  %v2411_v60 = vld [vmem:[#allocation6 + $0x1b8] sm:$0xff] }
 0x190   :  { %3208 = vmatpush3.bf16.msra.mxu1 %v3207_v56  ;;  %2990 = vmatprep.mubr.msk.f32.mxu1 %vm3386_vm1, %v3384_v0 }
 0x191   :  { %3212 = vmatprep.subr.bf16.mxu1 %v3385_v26 }
 0x192   :  { %v1135_v1 = vpop.permute.xlu1 %1134  ;;  %v975_v2 = vpop.permute.xlu0 %974 }
 0x193   :  { %2991 = vmatmul.mubr.msk.f32.vlgmr.msra.gmra.mrb[6].mxu1 %vm255_vm2, %v656_v54  ;;  %v1054_v54 = vld [vmem:[#allocation6 + $0xa0] sm:$0xff] }
 0x194   :  { %3214 = vmatpush3.bf16.msra.mxu1 %v3213_v61  ;;  %3004 = vmatprep.mubr.msk.f32.mxu1 %vm3386_vm1, %v3384_v0  ;;  %v3222_v58 = vpack.c.bf16 %v1055_v55, %v1054_v54  ;;  %v1214_v61 = vld [vmem:[#allocation6 + $0xc0] sm:$0xff] }
 0x195   :  { %3218 = vmatprep.subr.bf16.mxu1 %v3385_v26 }
 0x196   :  { %v1455_v6 = vpop.permute.xlu1 %1454  ;;  %v1295_v7 = vpop.permute.xlu0 %1294 }
 0x197   :  { %3005 = vmatmul.mubr.msk.f32.vlgmr.msra.gmra.mrb[8].mxu1 %vm255_vm2, %v816_v59  ;;  %v2410_v59 = vld [vmem:[#allocation6 + $0x1b0] sm:$0xff] }
 0x198   :  { %3220 = vmatpush3.bf16.msra.mxu1 %v3219_v3  ;;  %3018 = vmatprep.mubr.msk.f32.mxu1 %vm3386_vm1, %v3384_v0  ;;  %v3273_v63 = vpack.c.bf16 %v2411_v60, %v2410_v59  ;;  %v2571_v3 = vld [vmem:[#allocation6 + $0x1d8] sm:$0xff] }
 0x199   :  { %3224 = vmatprep.subr.bf16.mxu1 %v3385_v26 }
 0x19a   :  { %v1774_v11 = vpop.permute.xlu1 %1773  ;;  %v1614_v12 = vpop.permute.xlu0 %1613 }
 0x19b   :  { %3019 = vmatmul.mubr.msk.f32.vlgmr.msra.gmra.mrb[10].mxu1 %vm255_vm2, %v975_v2  ;;  %v2570_v2 = vld [vmem:[#allocation6 + $0x1d0] sm:$0xff] }
 0x19c   :  { %3226 = vmatpush3.bf16.msra.mxu1 %v3225_v8  ;;  %3032 = vmatprep.mubr.msk.f32.mxu1 %vm3386_vm1, %v3384_v0  ;;  %v2730_v8 = vld [vmem:[#allocation6 + $0x1f0] sm:$0xff] }
 0x19d   :  { %3230 = vmatprep.subr.bf16.mxu1 %v3385_v26 }
 0x19e   :  { %v3549_v16 = vpop.permute.xlu1 %2093  ;;  %v3551_v17 = vpop.permute.xlu0 %1933 }
 0x19f   :  { %3033 = vmatmul.mubr.msk.f32.vlgmr.msra.gmra.mrb[12].mxu1 %vm255_vm2, %v1135_v1  ;;  %v3228_v1 = vpack.c.bf16 %v1215_v62, %v1214_v61 }
 0x1a0   :  { %3232 = vmatpush3.bf16.msra.mxu1 %v3231_v13  ;;  %3046 = vmatprep.mubr.msk.f32.mxu1 %vm3386_vm1, %v3384_v0  ;;  %v3285_v13 = vpack.c.bf16 %v2731_v9, %v2730_v8 }
 0x1a1   :  { %3236 = vmatprep.subr.bf16.mxu1 %v3385_v26 }
 0x1a2   :  { %v3557_v21 = vpop.permute.xlu1 %2412  ;;  %v3559_v22 = vpop.permute.xlu0 %2252 }
 0x1a3   :  { %3047 = vmatmul.mubr.msk.f32.vlgmr.msra.gmra.mrb[14].mxu1 %vm255_vm2, %v1295_v7  ;;  %v3234_v7 = vpack.c.bf16 %v1375_v5, %v1374_v4 }
 0x1a4   :  { %3238 = vmatpush3.bf16.msra.mxu1 %v3237_v18  ;;  %3060 = vmatprep.mubr.msk.f32.mxu1 %vm3386_vm1, %v3384_v0 }
 0x1a5   :  { %3242 = vmatprep.subr.bf16.mxu1 %v3385_v26 }
 0x1a6   :  { %v3565_v30 = vpop.permute.xlu0 %2572  ;;  %v3568_v31 = vpop.permute.xlu1 %2732 }
 0x1a7   :  { %3061 = vmatmul.mubr.msk.f32.vlgmr.msra.gmra.mrb[16].mxu1 %vm255_vm2, %v1455_v6 }
 0x1a8   :  { %3244 = vmatpush3.bf16.msra.mxu1 %v3243_v23  ;;  %3074 = vmatprep.mubr.msk.f32.mxu1 %vm3386_vm1, %v3384_v0  ;;  %v2014_v23 = vld [vmem:[#allocation6 + $0x168] sm:$0xff] }
 0x1a9   :  { %3248 = vmatprep.subr.bf16.mxu1 %v3385_v26 }
 0x1aa   :  { %v418_v40 = vpop.permute.xlu0 %417  ;;  %v578_v49 = vpop.permute.xlu1 %577 }
 0x1ab   :  { %2970 = vmatmul.mubr.msk.f32.vlgmr.msra.gmra.mrb[4].mxu0 %vm255_vm2, %v418_v40  ;;  %3075 = vmatmul.mubr.msk.f32.vlgmr.msra.gmra.mrb[18].mxu1 %vm255_vm2, %v1614_v12  ;;  %v2652_v40 = vld [vmem:[#allocation6 + $0x1e0] sm:$0xff] }
 0x1ac   :  { %3250 = vmatpush3.bf16.msra.mxu1 %v3249_v32  ;;  %3205 = vmatpush3.bf16.msra.mxu0 %v3204_v33  ;;  %v2333_v32 = vld [vmem:[#allocation6 + $0x1a8] sm:$0xff] }
 0x1ad   :  { %2983 = vmatprep.mubr.msk.f32.mxu0 %vm3386_vm1, %v3384_v0  ;;  %3088 = vmatprep.mubr.msk.f32.mxu1 %vm3386_vm1, %v3384_v0 }
 0x1ae   :  { %3254 = vmatprep.subr.bf16.mxu1 %v3385_v26  ;;  %3209 = vmatprep.subr.bf16.mxu0 %v3385_v26  ;;  %v738_v56 = vpop.permute.xlu0 %737  ;;  %v1057_v6 = vpop.permute.xlu1 %1056 }
 0x1af   :  { %2984 = vmatmul.mubr.msk.f32.vlgmr.msra.gmra.mrb[6].mxu0 %vm255_vm2, %v578_v49  ;;  %3089 = vmatmul.mubr.msk.f32.vlgmr.msra.gmra.mrb[20].mxu1 %vm255_vm2, %v1774_v11  ;;  %v1535_v11 = vld [vmem:[#allocation6 + $0x108] sm:$0xff] }
 0x1b0   :  { %3256 = vmatpush3.bf16.msra.mxu1 %v3255_v41  ;;  %3211 = vmatpush3.bf16.msra.mxu0 %v3210_v42  ;;  %v3240_v14 = vpack.c.bf16 %v1535_v11, %v1534_v10  ;;  %v2653_v41 = vld [vmem:[#allocation6 + $0x1e8] sm:$0xff] }
 0x1b1   :  { %2997 = vmatprep.mubr.msk.f32.mxu0 %vm3386_vm1, %v3384_v0  ;;  %3102 = vmatprep.mubr.msk.f32.mxu1 %vm3386_vm1, %v3384_v0  ;;  %v3282_v45 = vpack.c.bf16 %v2653_v41, %v2652_v40 }
 0x1b2   :  { %3260 = vmatprep.subr.bf16.mxu1 %v3385_v26  ;;  %3215 = vmatprep.subr.bf16.mxu0 %v3385_v26  ;;  %v1217_v12 = vpop.permute.xlu0 %1216 }
 0x1b3   :  { %2998 = vmatmul.mubr.msk.f32.vlgmr.msra.gmra.mrb[8].mxu0 %vm255_vm2, %v738_v56  ;;  %3103 = vmatmul.mubr.msk.f32.vlgmr.msra.gmra.mrb[22].mxu1 %vm255_vm2, %v3551_v17  ;;  %v1377_v17 = vpop.permute.xlu1 %1376 }
 0x1b4   :  { %3262 = vmatpush3.bf16.msra.mxu1 %v3261_v50  ;;  %3217 = vmatpush3.bf16.msra.mxu0 %v3216_v51  ;;  %v77_v51 = vlaneseq }
 0x1b5   :  { %3011 = vmatprep.mubr.msk.f32.mxu0 %vm3386_vm1, %v3384_v0  ;;  %3116 = vmatprep.mubr.msk.f32.mxu1 %vm3386_vm1, %v3384_v0 }
 0x1b6   :  { %3266 = vmatprep.subr.bf16.mxu1 %v3385_v26  ;;  %3221 = vmatprep.subr.bf16.mxu0 %v3385_v26  ;;  %v1696_v24 = vpop.permute.xlu0 %1695  ;;  %v78_v53 = vshrl.u32 %v77_v51, 7 }
 0x1b7   :  { %3012 = vmatmul.mubr.msk.f32.vlgmr.msra.gmra.mrb[10].mxu0 %vm255_vm2, %v3480_v38  ;;  %3117 = vmatmul.mubr.msk.f32.vlgmr.msra.gmra.mrb[24].mxu1 %vm255_vm2, %v3549_v16  ;;  %v3279_v38 = vpack.c.bf16 %v2571_v3, %v2570_v2  ;;  %v1694_v16 = vld [vmem:[#allocation6 + $0x128] sm:$0xff]  ;;  %v1856_v29 = vpop.permute.xlu1 %1855 }
 0x1b8   :  { %3268 = vmatpush3.bf16.msra.mxu1 %v3267_v57  ;;  %3223 = vmatpush3.bf16.msra.mxu0 %v3222_v58  ;;  %v3246_v18 = vpack.c.bf16 %v1694_v16, %v1693_v15  ;;  %v79_v54 = vsub.s32 0, %v78_v53 }
 0x1b9   :  { %3025 = vmatprep.mubr.msk.f32.mxu0 %vm3386_vm1, %v3384_v0  ;;  %3130 = vmatprep.mubr.msk.f32.mxu1 %vm3386_vm1, %v3384_v0 }
 0x1ba   :  { %3272 = vmatprep.subr.bf16.mxu1 %v3385_v26  ;;  %3227 = vmatprep.subr.bf16.mxu0 %v3385_v26  ;;  %v2016_v33 = vpop.permute.xlu0 %2015 }
 0x1bb   :  { %3026 = vmatmul.mubr.msk.f32.vlgmr.msra.gmra.mrb[12].mxu0 %vm255_vm2, %v1057_v6  ;;  %3131 = vmatmul.mubr.msk.f32.vlgmr.msra.gmra.mrb[26].mxu1 %vm255_vm2, %v3559_v22  ;;  %v2013_v22 = vld [vmem:[#allocation6 + $0x160] sm:$0xff]  ;;  %v2335_v42 = vpop.permute.xlu1 %2334 }
 0x1bc   :  { %3274 = vmatpush3.bf16.msra.mxu1 %v3273_v63  ;;  %3229 = vmatpush3.bf16.msra.mxu0 %v3228_v1 }
 0x1bd   :  { %3039 = vmatprep.mubr.msk.f32.mxu0 %vm3386_vm1, %v3384_v0  ;;  %3144 = vmatprep.mubr.msk.f32.mxu1 %vm3386_vm1, %v3384_v0 }
 0x1be   :  { %3278 = vmatprep.subr.bf16.mxu1 %v3385_v26  ;;  %3233 = vmatprep.subr.bf16.mxu0 %v3385_v26 }
 0x1bf   :  { %3040 = vmatmul.mubr.msk.f32.vlgmr.msra.gmra.mrb[14].mxu0 %vm255_vm2, %v1217_v12  ;;  %3145 = vmatmul.mubr.msk.f32.vlgmr.msra.gmra.mrb[28].mxu1 %vm255_vm2, %v3557_v21  ;;  %v3252_v21 = vpack.c.bf16 %v1854_v20, %v1853_v19  ;;  %v2655_v46 = vpop.permute.xlu1 %2654 }
 0x1c0   :  { %3280 = vmatpush3.bf16.msra.mxu1 %v3279_v38  ;;  %3235 = vmatpush3.bf16.msra.mxu0 %v3234_v7 }
 0x1c1   :  { %3053 = vmatprep.mubr.msk.f32.mxu0 %vm3386_vm1, %v3384_v0  ;;  %3158 = vmatprep.mubr.msk.f32.mxu1 %vm3386_vm1, %v3384_v0 }
 0x1c2   :  { %3284 = vmatprep.subr.bf16.mxu1 %v3385_v26  ;;  %3239 = vmatprep.subr.bf16.mxu0 %v3385_v26 }
 0x1c3   :  { %3054 = vmatmul.mubr.msk.f32.vlgmr.msra.gmra.mrb[16].mxu0 %vm255_vm2, %v1377_v17  ;;  %3159 = vmatmul.mubr.msk.f32.vlgmr.msra.gmra.mrb[30].mxu1 %vm255_vm2, %v3565_v30  ;;  %v3264_v30 = vpack.c.bf16 %v2174_v28, %v2173_v27 }
 0x1c4   :  { %3286 = vmatpush3.bf16.msra.mxu1 %v3285_v13  ;;  %3241 = vmatpush3.bf16.msra.mxu0 %v3240_v14 }
 0x1c5   :  { %3067 = vmatprep.mubr.msk.f32.mxu0 %vm3386_vm1, %v3384_v0  ;;  %3172 = vmatprep.mubr.msk.f32.mxu1 %vm3386_vm1, %v3384_v0 }
 0x1c6   :  { %3245 = vmatprep.subr.bf16.mxu0 %v3385_v26 }
 0x1c7   :  { %3068 = vmatmul.mubr.msk.f32.vlgmr.msra.gmra.mrb[18].mxu0 %vm255_vm2, %v3487_v39  ;;  %3173 = vmatmul.mubr.msk.f32.vlgmr.msra.gmra.mrb[32].mxu1 %vm255_vm2, %v3568_v31  ;;  %v3258_v39 = vpack.c.bf16 %v2014_v23, %v2013_v22  ;;  %v2332_v31 = vld [vmem:[#allocation6 + $0x1a0] sm:$0xff] }
 0x1c8   :  { %3247 = vmatpush3.bf16.msra.mxu0 %v3246_v18  ;;  %3081 = vmatprep.mubr.msk.f32.mxu0 %vm3386_vm1, %v3384_v0  ;;  %v3270_v34 = vpack.c.bf16 %v2333_v32, %v2332_v31 }
 0x1c9   :  { %3251 = vmatprep.subr.bf16.mxu0 %v3385_v26 }
 0x1cb   :  { %3082 = vmatmul.mubr.msk.f32.vlgmr.msra.gmra.mrb[20].mxu0 %vm255_vm2, %v1696_v24 }
 0x1cc   :  { %3253 = vmatpush3.bf16.msra.mxu0 %v3252_v21  ;;  %3095 = vmatprep.mubr.msk.f32.mxu0 %vm3386_vm1, %v3384_v0 }
 0x1cd   :  { %3257 = vmatprep.subr.bf16.mxu0 %v3385_v26 }
 0x1cf   :  { %3096 = vmatmul.mubr.msk.f32.vlgmr.msra.gmra.mrb[22].mxu0 %vm255_vm2, %v1856_v29 }
 0x1d0   :  { %3259 = vmatpush3.bf16.msra.mxu0 %v3258_v39  ;;  %3109 = vmatprep.mubr.msk.f32.mxu0 %vm3386_vm1, %v3384_v0 }
 0x1d1   :  { %3263 = vmatprep.subr.bf16.mxu0 %v3385_v26 }
 0x1d3   :  { %3110 = vmatmul.mubr.msk.f32.vlgmr.msra.gmra.mrb[24].mxu0 %vm255_vm2, %v2016_v33 }
 0x1d4   :  { %3265 = vmatpush3.bf16.msra.mxu0 %v3264_v30  ;;  %3123 = vmatprep.mubr.msk.f32.mxu0 %vm3386_vm1, %v3384_v0 }
 0x1d5   :  { %3269 = vmatprep.subr.bf16.mxu0 %v3385_v26 }
 0x1d7   :  { %3124 = vmatmul.mubr.msk.f32.vlgmr.msra.gmra.mrb[26].mxu0 %vm255_vm2, %v3495_v43  ;;  %v2495_v43 = vpop.permute.xlu0 %2494 }
 0x1d8   :  { %3271 = vmatpush3.bf16.msra.mxu0 %v3270_v34  ;;  %3137 = vmatprep.mubr.msk.f32.mxu0 %vm3386_vm1, %v3384_v0 }
 0x1d9   :  { %3275 = vmatprep.subr.bf16.mxu0 %v3385_v26 }
 0x1db   :  { %3138 = vmatmul.mubr.msk.f32.vlgmr.msra.gmra.mrb[28].mxu0 %vm255_vm2, %v2335_v42 }
 0x1dc   :  { %3277 = vmatpush3.bf16.msra.mxu0 %v3276_v37  ;;  %3151 = vmatprep.mubr.msk.f32.mxu0 %vm3386_vm1, %v3384_v0 }
 0x1dd   :  { %3281 = vmatprep.subr.bf16.mxu0 %v3385_v26 }
 0x1df   :  { %3152 = vmatmul.mubr.msk.f32.vlgmr.msra.gmra.mrb[30].mxu0 %vm255_vm2, %v2495_v43 }
 0x1e0   :  { %3283 = vmatpush3.bf16.msra.mxu0 %v3282_v45  ;;  %3165 = vmatprep.mubr.msk.f32.mxu0 %vm3386_vm1, %v3384_v0 }
 0x1e3   :  { %3166 = vmatmul.mubr.msk.f32.vlgmr.msra.gmra.mrb[32].mxu0 %vm255_vm2, %v2655_v46 }
 0x1ec   :  { %v325_v47 = vpop.f32.mrb[2].mxu0 }
 0x1ed   :  { %330 = vst.msk [vmem:[%s3821_s5] sm:$0xff] %vm329_vm4, %v325_v47  ;;  %v2957_v48 = vpop.f32.mrb[3].mxu0 }
 0x1f8   :  { %v72_v49 = vpop.xlane.xlu0 %71 }
 0x1f9   :  { %v73_v26 = vmax.f32 %v72_v49, 1e-24 }
 0x1fb   :  { %3303 = vrsqrt.f32 %v73_v26 }
 0x1fd   :  { %v63_v50 = vpop.xlane.xlu1 %62 }
 0x1fe   :  { %v64_v52 = vmax.f32 %v63_v50, 1e-24 }
 0x200   :  { %3305 = vrsqrt.f32 %v64_v52 }
 0x205   :  { %v3304_v0 = vpop.eup %3303 }
 0x206   :  { %v75_v55 = vmul.f32 %v3304_v0, %v3522_v44 }
 0x208   :  { %v80_v56 = vrot.slane %v75_v55, %v79_v54 }
 0x20a   :  { %v3306_v57 = vpop.eup %3305 }
 0x20b   :  { %v66_v58 = vmul.f32 %v3306_v57, %v3462_v25 }
 0x20d   :  { %v82_v59 = vmul.f32 %v80_v56, %v66_v58 }
 0x20f   :  { %v83_v60 = vsel %vm60_vm0, %v82_v59, 0.0 }
 0x210   :  { %84 = vadd.xlane.f32.xlu0 %v83_v60 }
 0x25e   :  { %v404_v61 = vpop.f32.mrb[2].mxu1 }
 0x25f   :  { %v2964_v62 = vpop.f32.mrb[3].mxu1  ;;  %409 = vrot.lane.b32.xlu0 %v404_v61, %s3391_s10 }
 0x262   :  { %v565_v63 = vpop.f32.mrb[4].mxu1 }
 0x263   :  { %v2978_v1 = vpop.f32.mrb[5].mxu1  ;;  %570 = vrot.lane.b32.xlu1 %v565_v63, %s3391_s10 }
 0x266   :  { %v725_v2 = vpop.f32.mrb[6].mxu1 }
 0x267   :  { %v2992_v3 = vpop.f32.mrb[7].mxu1  ;;  %730 = vrot.lane.b32.xlu1 %v725_v2, %s3391_s10 }
 0x26a   :  { %v885_v44 = vpop.f32.mrb[8].mxu1 }
 0x26b   :  { %v3006_v4 = vpop.f32.mrb[9].mxu1  ;;  %890 = vrot.lane.b32.xlu0 %v885_v44, %s3391_s10 }
 0x26e   :  { %v1044_v25 = vpop.f32.mrb[10].mxu1 }
 0x26f   :  { %v3020_v5 = vpop.f32.mrb[11].mxu1  ;;  %1049 = vrot.lane.b32.xlu1 %v1044_v25, %s3391_s10 }
 0x272   :  { %v1204_v6 = vpop.f32.mrb[12].mxu1 }
 0x273   :  { %v3034_v38 = vpop.f32.mrb[13].mxu1  ;;  %1209 = vrot.lane.b32.xlu0 %v1204_v6, %s3391_s10 }
 0x276   :  { %v1364_v7 = vpop.f32.mrb[14].mxu1 }
 0x277   :  { %v3048_v8 = vpop.f32.mrb[15].mxu1  ;;  %1369 = vrot.lane.b32.xlu1 %v1364_v7, %s3391_s10 }
 0x27a   :  { %v1524_v9 = vpop.f32.mrb[16].mxu1 }
 0x27b   :  { %v3062_v10 = vpop.f32.mrb[17].mxu1  ;;  %1529 = vrot.lane.b32.xlu0 %v1524_v9, %s3391_s10 }
 0x27e   :  { %v487_v11 = vpop.f32.mrb[4].mxu0  ;;  %v1683_v12 = vpop.f32.mrb[18].mxu1 }
 0x27f   :  { %491 = vst.msk [vmem:[%s3821_s5 + $0x8] sm:$0xff] %vm329_vm4, %v487_v11  ;;  %v2971_v13 = vpop.f32.mrb[5].mxu0  ;;  %v3076_v14 = vpop.f32.mrb[19].mxu1  ;;  %1688 = vrot.lane.b32.xlu1 %v1683_v12, %s3391_s10 }
 0x282   :  { %v647_v15 = vpop.f32.mrb[6].mxu0  ;;  %v1843_v16 = vpop.f32.mrb[20].mxu1 }
 0x283   :  { %651 = vst.msk [vmem:[%s3821_s5 + $0x10] sm:$0xff] %vm329_vm4, %v647_v15  ;;  %v2985_v17 = vpop.f32.mrb[7].mxu0  ;;  %v3090_v18 = vpop.f32.mrb[21].mxu1  ;;  %1848 = vrot.lane.b32.xlu0 %v1843_v16, %s3391_s10 }
 0x286   :  { %v807_v19 = vpop.f32.mrb[8].mxu0  ;;  %v2003_v20 = vpop.f32.mrb[22].mxu1 }
 0x287   :  { %811 = vst.msk [vmem:[%s3821_s5 + $0x18] sm:$0xff] %vm329_vm4, %v807_v19  ;;  %v2999_v21 = vpop.f32.mrb[9].mxu0  ;;  %v3104_v22 = vpop.f32.mrb[23].mxu1  ;;  %2008 = vrot.lane.b32.xlu1 %v2003_v20, %s3391_s10 }
 0x28a   :  { %v966_v23 = vpop.f32.mrb[10].mxu0  ;;  %v2163_v24 = vpop.f32.mrb[24].mxu1 }
 0x28b   :  { %970 = vst.msk [vmem:[%s3821_s5 + $0x20] sm:$0xff] %vm329_vm4, %v966_v23  ;;  %v3013_v39 = vpop.f32.mrb[11].mxu0  ;;  %v3118_v27 = vpop.f32.mrb[25].mxu1  ;;  %2168 = vrot.lane.b32.xlu0 %v2163_v24, %s3391_s10 }
 0x28e   :  { %v1126_v28 = vpop.f32.mrb[12].mxu0  ;;  %v2322_v29 = vpop.f32.mrb[26].mxu1 }
 0x28f   :  { %1130 = vst.msk [vmem:[%s3821_s5 + $0x28] sm:$0xff] %vm329_vm4, %v1126_v28  ;;  %v3027_v30 = vpop.f32.mrb[13].mxu0  ;;  %v3132_v31 = vpop.f32.mrb[27].mxu1  ;;  %2327 = vrot.lane.b32.xlu1 %v2322_v29, %s3391_s10 }
 0x292   :  { %v1286_v32 = vpop.f32.mrb[14].mxu0  ;;  %v2482_v33 = vpop.f32.mrb[28].mxu1 }
 0x293   :  { %1290 = vst.msk [vmem:[%s3821_s5 + $0x30] sm:$0xff] %vm329_vm4, %v1286_v32  ;;  %v3041_v34 = vpop.f32.mrb[15].mxu0  ;;  %v3146_v35 = vpop.f32.mrb[29].mxu1  ;;  %2487 = vrot.lane.b32.xlu0 %v2482_v33, %s3391_s10 }
 0x296   :  { %v1446_v36 = vpop.f32.mrb[16].mxu0  ;;  %v2642_v37 = vpop.f32.mrb[30].mxu1 }
 0x297   :  { %1450 = vst.msk [vmem:[%s3821_s5 + $0x38] sm:$0xff] %vm329_vm4, %v1446_v36  ;;  %v3055_v40 = vpop.f32.mrb[17].mxu0  ;;  %v3160_v41 = vpop.f32.mrb[31].mxu1  ;;  %2647 = vrot.lane.b32.xlu1 %v2642_v37, %s3391_s10 }
 0x29a   :  { %v1605_v42 = vpop.f32.mrb[18].mxu0  ;;  %v2802_v45 = vpop.f32.mrb[32].mxu1 }
 0x29b   :  { %1609 = vst.msk [vmem:[%s3821_s5 + $0x40] sm:$0xff] %vm329_vm4, %v1605_v42  ;;  %v3069_v43 = vpop.f32.mrb[19].mxu0  ;;  %v3174_v46 = vpop.f32.mrb[33].mxu1  ;;  %2807 = vrot.lane.b32.xlu0 %v2802_v45, %s3391_s10 }
 0x29d   :  { %v85_v47 = vpop.xlane.xlu0 %84 }
 0x29e   :  { %v1765_v48 = vpop.f32.mrb[20].mxu0  ;;  %87 = vst.msk [vmem:[%s3820_s4] sm:$0xff] %vm86_vm5, %v85_v47 }
 0x29f   :  { %1769 = vst.msk [vmem:[%s3821_s5 + $0x48] sm:$0xff] %vm329_vm4, %v1765_v48  ;;  %v3083_v49 = vpop.f32.mrb[21].mxu0 }
 0x2a2   :  { %v1925_v26 = vpop.f32.mrb[22].mxu0 }
 0x2a3   :  { %1929 = vst.msk [vmem:[%s3821_s5 + $0x50] sm:$0xff] %vm329_vm4, %v1925_v26  ;;  %v3097_v50 = vpop.f32.mrb[23].mxu0 }
 0x2a6   :  { %v2085_v51 = vpop.f32.mrb[24].mxu0 }
 0x2a7   :  { %2089 = vst.msk [vmem:[%s3821_s5 + $0x58] sm:$0xff] %vm329_vm4, %v2085_v51  ;;  %v3111_v52 = vpop.f32.mrb[25].mxu0 }
 0x2aa   :  { %v2244_v53 = vpop.f32.mrb[26].mxu0 }
 0x2ab   :  { %2248 = vst.msk [vmem:[%s3821_s5 + $0x60] sm:$0xff] %vm329_vm4, %v2244_v53  ;;  %v3125_v0 = vpop.f32.mrb[27].mxu0 }
 0x2ae   :  { %v2404_v54 = vpop.f32.mrb[28].mxu0 }
 0x2af   :  { %2408 = vst.msk [vmem:[%s3821_s5 + $0x68] sm:$0xff] %vm329_vm4, %v2404_v54  ;;  %v3139_v55 = vpop.f32.mrb[29].mxu0 }
 0x2b2   :  { %v2564_v56 = vpop.f32.mrb[30].mxu0 }
 0x2b3   :  { %2568 = vst.msk [vmem:[%s3821_s5 + $0x70] sm:$0xff] %vm329_vm4, %v2564_v56  ;;  %v3153_v57 = vpop.f32.mrb[31].mxu0 }
 0x2b6   :  { %v2724_v58 = vpop.f32.mrb[32].mxu0 }
 0x2b7   :  { %2728 = vst.msk [vmem:[%s3821_s5 + $0x78] sm:$0xff] %vm329_vm4, %v2724_v58  ;;  %v3167_v59 = vpop.f32.mrb[33].mxu0 }
 0x2d1   :  { %v410_v60 = vpop.permute.xlu0 %409 }
 0x2d2   :  { %413 = vst.msk [vmem:[%s3821_s5] sm:$0xff] %vm412_vm6, %v410_v60 }
 0x2d5   :  { %v571_v61 = vpop.permute.xlu1 %570 }
 0x2d6   :  { %573 = vst.msk [vmem:[%s3821_s5 + $0x8] sm:$0xff] %vm412_vm6, %v571_v61 }
 0x2d9   :  { %v731_v62 = vpop.permute.xlu1 %730 }
 0x2da   :  { %733 = vst.msk [vmem:[%s3821_s5 + $0x10] sm:$0xff] %vm412_vm6, %v731_v62 }
 0x2dd   :  { %v891_v63 = vpop.permute.xlu0 %890 }
 0x2de   :  { %893 = vst.msk [vmem:[%s3821_s5 + $0x18] sm:$0xff] %vm412_vm6, %v891_v63 }
 0x2e1   :  { %v1050_v1 = vpop.permute.xlu1 %1049 }
 0x2e2   :  { %1052 = vst.msk [vmem:[%s3821_s5 + $0x20] sm:$0xff] %vm412_vm6, %v1050_v1 }
 0x2e5   :  { %v1210_v2 = vpop.permute.xlu0 %1209 }
 0x2e6   :  { %1212 = vst.msk [vmem:[%s3821_s5 + $0x28] sm:$0xff] %vm412_vm6, %v1210_v2 }
 0x2e9   :  { %v1370_v3 = vpop.permute.xlu1 %1369 }
 0x2ea   :  { %1372 = vst.msk [vmem:[%s3821_s5 + $0x30] sm:$0xff] %vm412_vm6, %v1370_v3 }
 0x2ed   :  { %v1530_v44 = vpop.permute.xlu0 %1529 }
 0x2ee   :  { %1532 = vst.msk [vmem:[%s3821_s5 + $0x38] sm:$0xff] %vm412_vm6, %v1530_v44 }
 0x2f1   :  { %v1689_v4 = vpop.permute.xlu1 %1688 }
 0x2f2   :  { %1691 = vst.msk [vmem:[%s3821_s5 + $0x40] sm:$0xff] %vm412_vm6, %v1689_v4 }
 0x2f5   :  { %v1849_v25 = vpop.permute.xlu0 %1848 }
 0x2f6   :  { %1851 = vst.msk [vmem:[%s3821_s5 + $0x48] sm:$0xff] %vm412_vm6, %v1849_v25 }
 0x2f9   :  { %v2009_v5 = vpop.permute.xlu1 %2008 }
 0x2fa   :  { %2011 = vst.msk [vmem:[%s3821_s5 + $0x50] sm:$0xff] %vm412_vm6, %v2009_v5 }
 0x2fd   :  { %v2169_v6 = vpop.permute.xlu0 %2168 }
 0x2fe   :  { %2171 = vst.msk [vmem:[%s3821_s5 + $0x58] sm:$0xff] %vm412_vm6, %v2169_v6 }
 0x301   :  { %v2328_v38 = vpop.permute.xlu1 %2327 }
 0x302   :  { %2330 = vst.msk [vmem:[%s3821_s5 + $0x60] sm:$0xff] %vm412_vm6, %v2328_v38 }
 0x305   :  { %v2488_v7 = vpop.permute.xlu0 %2487 }
 0x306   :  { %2490 = vst.msk [vmem:[%s3821_s5 + $0x68] sm:$0xff] %vm412_vm6, %v2488_v7 }
 0x309   :  { %v2648_v8 = vpop.permute.xlu1 %2647 }
 0x30a   :  { %2650 = vst.msk [vmem:[%s3821_s5 + $0x70] sm:$0xff] %vm412_vm6, %v2648_v8 }
 0x30d   :  { %v2808_v9 = vpop.permute.xlu0 %2807 }
 0x30e   :  { %2810 = vst.msk [vmem:[%s3821_s5 + $0x78] sm:$0xff] %vm412_vm6, %v2808_v9 }
 0x30f   :  { %2819 = vsyncpa [#allocation3], 1 }
 0x310   :  { %2820 = vsyncpa [#allocation5], 1 }

</bundles_post_ra>
